<compile_context>
chip_gen: v7x
topology: tpu7x:2x2x1
jax: 0.10.0
libtpu: 0.0.40
codegen_flags: <defaults>
</compile_context>

<pallas_src>
import functools

import jax
import jax.numpy as jnp
from jax import lax
from jax.experimental import pallas as pl
from jax.experimental.pallas import tpu as pltpu

_LN_EPS = 1e-5
_INV_SQRT2 = 0.7071067811865476
_LANE = 128


def _round_up(a: int, b: int) -> int:
    return (a + b - 1) // b * b


def _cdiv(a: int, b: int) -> int:
    return (a + b - 1) // b


def _hw_vmem_bytes() -> int:
    """Physical VMEM per TensorCore (generation-aware); conservative fallback."""
    try:
        return int(pltpu.get_tpu_info().vmem_capacity_bytes)
    except Exception:
        return 64 * 1024 * 1024  # v7x per-core size: safe lower bound everywhere


def _choose_tiling(m: int, d_pad: int):
    """Pick the row tile from a generation-aware VMEM budget and the scoped VMEM limit."""
    vmem_cap = _hw_vmem_bytes()
    vmem_limit = min(vmem_cap * 3 // 4, 100 * 1024 * 1024)   # 48 MiB v7x, 96 MiB v5e/v6e
    budget = min(vmem_cap // 3, 32 * 1024 * 1024)            # ~21 MiB v7x, 32 MiB v5e/v6e

    # Fixed footprint: W (bf16) and bias (f32) are VMEM-resident but BlockSpec still
    # double-buffers them; plus the double-buffered (2, 8, d_pad) f32 partial-sum block.
    fixed = 2 * d_pad * d_pad * 2 + 2 * d_pad * 4 + 2 * 2 * 8 * d_pad * 4
    # Per-row footprint (worst of the two passes): double-buffered f32 x tile + f32 out tile.
    per_row = 2 * d_pad * 4 + 2 * d_pad * 4

    tm = (budget - fixed) // per_row
    if tm < 8:
        # TODO(synk): stream W in (tk, tn) blocks over an extra grid axis instead of collapsing tm.
        tm = 8
    tm = max(8, (int(tm) // 8) * 8)
    tm = min(tm, 512)                                   # diminishing returns past ~512 rows
    tm = min(tm, max(8, _round_up(_cdiv(m, 2), 8)))     # >= 2 tiles so v7x megacore shards
    tm = min(tm, _round_up(m, 8))                       # don't exceed (padded) problem size
    return int(tm), int(vmem_limit)


# ---------------------------------------------------------------------------
# Pass 1: linear + GELU, emit per-tile partial column sums only (no g writeback)
# ---------------------------------------------------------------------------
def _stats_kernel(x_ref, w_ref, b_ref, sums_ref, *, tm, d_pad):
    x = x_ref[...].astype(jnp.bfloat16)          # in-kernel cast: no wrapper-side HBM copy of x
    y = jnp.dot(x, w_ref[...], preferred_element_type=jnp.float32) + b_ref[...]
    # Exact (erf-based) GELU in f32, matching F.gelu(..., approximate='none').
    g = 0.5 * y * (1.0 + lax.erf(y * _INV_SQRT2))

    # Per-sublane-residue column sums: pure VPU adds (no cross-lane/XLU work in the kernel),
    # written as dense (8, d_pad) slabs.  The tiny cross-lane reduce happens in the epilogue.
    g8 = g.reshape(tm // 8, 8, d_pad)
    sums_ref[0, 0] = jnp.sum(g8, axis=0)
    sums_ref[0, 1] = jnp.sum(g8 * g8, axis=0)


# ---------------------------------------------------------------------------
# Pass 2: recompute linear + GELU, apply global layer-norm (SMEM scalars)
# ---------------------------------------------------------------------------
def _apply_kernel(stats_ref, x_ref, w_ref, b_ref, o_ref):
    x = x_ref[...].astype(jnp.bfloat16)
    y = jnp.dot(x, w_ref[...], preferred_element_type=jnp.float32) + b_ref[...]
    g = 0.5 * y * (1.0 + lax.erf(y * _INV_SQRT2))
    mean = stats_ref[0]
    rstd = stats_ref[1]
    o_ref[...] = ((g - mean) * rstd).astype(o_ref.dtype)


# ---------------------------------------------------------------------------
# Wrapper
# ---------------------------------------------------------------------------
@functools.partial(jax.jit, static_argnames=("tm",))
def classification_layer(x, weight, bias, *, tm=None):
    """x: (..., D) f32; weight: (D_out, D_in) torch layout; bias: (D_out,).

    Note: for inference with static params, hoist the transpose / pad / bf16 cast of `weight`
    out of the per-call path (here it folds into the jit)."""
    orig_shape = x.shape
    d = orig_shape[-1]
    x2d = x.reshape(-1, d)
    m = x2d.shape[0]

    d_pad = _round_up(d, _LANE)
    auto_tm, vmem_limit = _choose_tiling(m, d_pad)
    if tm is None:
        tm = auto_tm
    tm = max(8, (int(tm) // 8) * 8)
    m_pad = _round_up(m, tm)
    num_tiles = m_pad // tm

    need_pad = (d_pad != d) or (m_pad != m)
    if need_pad:
        # Unaligned case: pad once (cast to bf16 so the extra HBM copy is half-size).
        xp = jnp.pad(x2d.astype(jnp.bfloat16), ((0, m_pad - m), (0, d_pad - d)))
    else:
        # Aligned case: feed f32 straight in; the kernel casts to bf16 (no extra copy).
        xp = x2d
    wp = jnp.pad(weight.T.astype(jnp.bfloat16), ((0, d_pad - d), (0, d_pad - d)))  # (in, out)
    bp = jnp.pad(bias.astype(jnp.float32), (0, d_pad - d)).reshape(1, d_pad)

    cparams = pltpu.CompilerParams(
        dimension_semantics=("parallel",),
        vmem_limit_bytes=vmem_limit,
    )

    # ---- Pass 1: partial column sums of g and g*g -----------------------------------------
    sums = pl.pallas_call(
        functools.partial(_stats_kernel, tm=tm, d_pad=d_pad),
        out_shape=jax.ShapeDtypeStruct((num_tiles, 2, 8, d_pad), jnp.float32),
        grid=(num_tiles,),
        in_specs=[
            pl.BlockSpec((tm, d_pad), lambda i: (i, 0)),       # activation stream
            pl.BlockSpec((d_pad, d_pad), lambda i: (0, 0)),    # W resident in VMEM
            pl.BlockSpec((1, d_pad), lambda i: (0, 0)),        # bias resident
        ],
        out_specs=pl.BlockSpec((1, 2, 8, d_pad), lambda i: (i, 0, 0, 0)),
        compiler_params=cparams,
    )(xp, wp, bp)

    # ---- Epilogue: global statistics over the M*D *valid* elements ------------------------
    # Padded D-columns contribute exactly 0 (zero W columns + zero bias => gelu(0)=0).
    # Each padded row contributes exactly gelu(bias) -> subtract analytically (no in-kernel mask).
    # TODO(synk): for very large M*D use a compensated / pairwise combine here.
    n = jnp.float32(m * d)
    s1 = jnp.sum(sums[:, 0])
    s2 = jnp.sum(sums[:, 1])
    if m_pad != m:
        bf = bias.astype(jnp.float32)
        gb = 0.5 * bf * (1.0 + lax.erf(bf * _INV_SQRT2))
        n_pad_rows = jnp.float32(m_pad - m)
        s1 = s1 - n_pad_rows * jnp.sum(gb)
        s2 = s2 - n_pad_rows * jnp.sum(gb * gb)
    mean = s1 / n
    var = jnp.maximum(s2 / n - mean * mean, 0.0)
    rstd = lax.rsqrt(var + _LN_EPS)
    stats = jnp.stack([mean, rstd]).astype(jnp.float32)      # (2,) -> SMEM scalars

    # ---- Pass 2: recompute linear+GELU and normalize ---------------------------------------
    out_full = pl.pallas_call(
        _apply_kernel,
        out_shape=jax.ShapeDtypeStruct((m_pad, d_pad), jnp.float32),
        grid=(num_tiles,),
        in_specs=[
            pl.BlockSpec(memory_space=pltpu.MemorySpace.SMEM),  # (mean, rstd)
            pl.BlockSpec((tm, d_pad), lambda i: (i, 0)),
            pl.BlockSpec((d_pad, d_pad), lambda i: (0, 0)),
            pl.BlockSpec((1, d_pad), lambda i: (0, 0)),
        ],
        out_specs=pl.BlockSpec((tm, d_pad), lambda i: (i, 0)),
        compiler_params=cparams,
    )(stats, xp, wp, bp)

    out = out_full[:m, :d] if need_pad else out_full
    return out.reshape(orig_shape)


# ---------------------------------------------------------------------------
# Reference (pure JAX) + demo
# ---------------------------------------------------------------------------
def _reference(x, weight, bias, *, cast_bf16):
    if cast_bf16:  # mimic bf16 MXU inputs with f32 accumulation
        xm = x.astype(jnp.bfloat16).astype(jnp.float32)
        wm = weight.astype(jnp.bfloat16).astype(jnp.float32)
    else:
        xm, wm = x, weight
    y = jnp.einsum("...i,oi->...o", xm, wm, preferred_element_type=jnp.float32) + bias
    g = 0.5 * y * (1.0 + lax.erf(y * _INV_SQRT2))
    mean = jnp.mean(g)
    var = jnp.mean((g - mean) ** 2)
    return (g - mean) * lax.rsqrt(var + _LN_EPS)


if __name__ == "__main__":
    def run_case(b, s, d):
        key = jax.random.PRNGKey(0)
        kx, kw, kb = jax.random.split(key, 3)
        bound = 1.0 / float(d) ** 0.5
        weight = jax.random.uniform(kw, (d, d), jnp.float32, -bound, bound)  # (out, in)
        bias = jax.random.uniform(kb, (d,), jnp.float32, -bound, bound)
        x = jax.random.normal(kx, (b, s, d), jnp.float32)

        out = jax.block_until_ready(classification_layer(x, weight, bias))
        assert out.shape == x.shape

        # Tight check vs a reference using the same bf16 matmul inputs.
        ref_bf = _reference(x, weight, bias, cast_bf16=True)
        assert jnp.allclose(out, ref_bf, atol=2e-3, rtol=2e-3), "mismatch vs bf16-input reference"
        # Loose check vs exact f32 PyTorch-semantics reference (bf16 MXU inputs).
        ref_f32 = _reference(x, weight, bias, cast_bf16=False)
        assert jnp.allclose(out, ref_f32, atol=7e-2, rtol=7e-2), "mismatch vs f32 reference"

    # Lane-aligned D, no-padding fast path (in-kernel bf16 cast), multi-tile "parallel" grid.
    run_case(2, 128, 256)
    # Tiny torch-like dims: exercises D->128 padding and the padded-row epilogue correction.
    run_case(3, 5, 32)

    print("KERNEL_OK")
</pallas_src>

<mosaic_0001>
module attributes {stable_mosaic.version = 11 : i64} {
  func.func @_stats_kernel(%arg0: i32, %arg1: memref<128x256xf32, #tpu.memory_space<vmem>>, %arg2: memref<256x256xbf16, #tpu.memory_space<vmem>>, %arg3: memref<1x256xf32, #tpu.memory_space<vmem>>, %arg4: memref<1x2x8x256xf32, #tpu.memory_space<vmem>>) attributes {dimension_semantics = [#tpu.dimension_semantics<parallel>], iteration_bounds = array<i64: 2>, scalar_prefetch = 0 : i64, scratch_operands = 0 : i64, tpu.core_type = #tpu.core_type<tc>, window_params = [{transform_indices = @transform_0, window_bounds = array<i64: 128, 256>}, {pipeline_mode = #tpu.pipeline_mode<synchronous>, transform_indices = @transform_1, window_bounds = array<i64: 256, 256>}, {pipeline_mode = #tpu.pipeline_mode<synchronous>, transform_indices = @transform_2, window_bounds = array<i64: 1, 256>}, {transform_indices = @transform_3, window_bounds = array<i64: 1, 2, 8, 256>}]} {
    %c0 = arith.constant 0 : index
    %c0_0 = arith.constant 0 : index
    %0 = vector.load %arg1[%c0, %c0_0] : memref<128x256xf32, #tpu.memory_space<vmem>>, vector<128x256xf32>
    %1 = arith.truncf %0 : vector<128x256xf32> to vector<128x256xbf16>
    %c0_1 = arith.constant 0 : index
    %c0_2 = arith.constant 0 : index
    %2 = vector.load %arg2[%c0_1, %c0_2] : memref<256x256xbf16, #tpu.memory_space<vmem>>, vector<256x256xbf16>
    %cst = arith.constant dense<0.000000e+00> : vector<128x256xf32>
    %3 = tpu.matmul %1, %2, %cst {dimension_numbers = #tpu.dot_dimension_numbers<[1], [0], [0], [1], [0, 0, 1, 1], [], []>} : vector<128x256xbf16>, vector<256x256xbf16>, vector<128x256xf32> -> vector<128x256xf32>
    %c0_3 = arith.constant 0 : index
    %c0_4 = arith.constant 0 : index
    %4 = vector.load %arg3[%c0_3, %c0_4] : memref<1x256xf32, #tpu.memory_space<vmem>>, vector<1x256xf32>
    %5 = vector.broadcast %4 : vector<1x256xf32> to vector<128x256xf32>
    %6 = arith.addf %3, %5 : vector<128x256xf32>
    %cst_5 = arith.constant 5.000000e-01 : f32
    %7 = vector.broadcast %cst_5 : f32 to vector<128x256xf32>
    %8 = arith.mulf %7, %6 : vector<128x256xf32>
    %cst_6 = arith.constant 0.707106769 : f32
    %9 = vector.broadcast %cst_6 : f32 to vector<128x256xf32>
    %10 = arith.mulf %6, %9 : vector<128x256xf32>
    %11 = math.erf %10 : vector<128x256xf32>
    %cst_7 = arith.constant 1.000000e+00 : f32
    %12 = vector.broadcast %cst_7 : f32 to vector<128x256xf32>
    %13 = arith.addf %12, %11 : vector<128x256xf32>
    %14 = arith.mulf %8, %13 : vector<128x256xf32>
    %15 = vector.shape_cast %14 : vector<128x256xf32> to vector<16x8x256xf32>
    %cst_8 = arith.constant dense<0.000000e+00> : vector<8x256xf32>
    %16 = vector.multi_reduction <add>, %15, %cst_8 [0] : vector<16x8x256xf32> to vector<8x256xf32>
    %c0_9 = arith.constant 0 : index
    %c0_10 = arith.constant 0 : index
    %c0_11 = arith.constant 0 : index
    %c0_12 = arith.constant 0 : index
    %17 = vector.load %arg4[%c0_9, %c0_10, %c0_11, %c0_12] : memref<1x2x8x256xf32, #tpu.memory_space<vmem>>, vector<1x1x8x256xf32>
    %18 = vector.shape_cast %17 : vector<1x1x8x256xf32> to vector<8x256xf32>
    %19 = vector.shape_cast %16 : vector<8x256xf32> to vector<1x1x8x256xf32>
    tpu.vector_store %arg4[%c0_9, %c0_10, %c0_11, %c0_12], %19 {strides = array<i32>} : memref<1x2x8x256xf32, #tpu.memory_space<vmem>>, vector<1x1x8x256xf32>,
    %20 = arith.mulf %15, %15 : vector<16x8x256xf32>
    %cst_13 = arith.constant dense<0.000000e+00> : vector<8x256xf32>
    %21 = vector.multi_reduction <add>, %20, %cst_13 [0] : vector<16x8x256xf32> to vector<8x256xf32>
    %c0_14 = arith.constant 0 : index
    %c1 = arith.constant 1 : index
    %c0_15 = arith.constant 0 : index
    %c0_16 = arith.constant 0 : index
    %22 = vector.load %arg4[%c0_14, %c1, %c0_15, %c0_16] : memref<1x2x8x256xf32, #tpu.memory_space<vmem>>, vector<1x1x8x256xf32>
    %23 = vector.shape_cast %22 : vector<1x1x8x256xf32> to vector<8x256xf32>
    %24 = vector.shape_cast %21 : vector<8x256xf32> to vector<1x1x8x256xf32>
    tpu.vector_store %arg4[%c0_14, %c1, %c0_15, %c0_16], %24 {strides = array<i32>} : memref<1x2x8x256xf32, #tpu.memory_space<vmem>>, vector<1x1x8x256xf32>,
    return
  }
  func.func @transform_0(%arg0: i32) -> (i32, i32) {
    %c0_i32 = arith.constant 0 : i32
    %c0_i32_0 = arith.constant 0 : i32
    return %arg0, %c0_i32 : i32, i32
  }
  func.func @transform_1(%arg0: i32) -> (i32, i32) {
    %c0_i32 = arith.constant 0 : i32
    %c0_i32_0 = arith.constant 0 : i32
    %c0_i32_1 = arith.constant 0 : i32
    return %c0_i32, %c0_i32_0 : i32, i32
  }
  func.func @transform_2(%arg0: i32) -> (i32, i32) {
    %c0_i32 = arith.constant 0 : i32
    %c0_i32_0 = arith.constant 0 : i32
    %c0_i32_1 = arith.constant 0 : i32
    return %c0_i32, %c0_i32_0 : i32, i32
  }
  func.func @transform_3(%arg0: i32) -> (i32, i32, i32, i32) {
    %c0_i32 = arith.constant 0 : i32
    %c0_i32_0 = arith.constant 0 : i32
    %c0_i32_1 = arith.constant 0 : i32
    %c0_i32_2 = arith.constant 0 : i32
    return %arg0, %c0_i32, %c0_i32_0, %c0_i32_1 : i32, i32, i32, i32
  }
}

module attributes {stable_mosaic.version = 11 : i64} {
  func.func @_apply_kernel(%arg0: i32, %arg1: memref<2xf32, #tpu.memory_space<smem>>, %arg2: memref<128x256xf32, #tpu.memory_space<vmem>>, %arg3: memref<256x256xbf16, #tpu.memory_space<vmem>>, %arg4: memref<1x256xf32, #tpu.memory_space<vmem>>, %arg5: memref<128x256xf32, #tpu.memory_space<vmem>>) attributes {dimension_semantics = [#tpu.dimension_semantics<parallel>], iteration_bounds = array<i64: 2>, scalar_prefetch = 0 : i64, scratch_operands = 0 : i64, tpu.core_type = #tpu.core_type<tc>, window_params = [{transform_indices = @transform_0, window_bounds = array<i64: 2>}, {transform_indices = @transform_1, window_bounds = array<i64: 128, 256>}, {pipeline_mode = #tpu.pipeline_mode<synchronous>, transform_indices = @transform_2, window_bounds = array<i64: 256, 256>}, {pipeline_mode = #tpu.pipeline_mode<synchronous>, transform_indices = @transform_3, window_bounds = array<i64: 1, 256>}, {transform_indices = @transform_4, window_bounds = array<i64: 128, 256>}]} {
    %c0 = arith.constant 0 : index
    %c0_0 = arith.constant 0 : index
    %0 = vector.load %arg2[%c0, %c0_0] : memref<128x256xf32, #tpu.memory_space<vmem>>, vector<128x256xf32>
    %1 = arith.truncf %0 : vector<128x256xf32> to vector<128x256xbf16>
    %c0_1 = arith.constant 0 : index
    %c0_2 = arith.constant 0 : index
    %2 = vector.load %arg3[%c0_1, %c0_2] : memref<256x256xbf16, #tpu.memory_space<vmem>>, vector<256x256xbf16>
    %cst = arith.constant dense<0.000000e+00> : vector<128x256xf32>
    %3 = tpu.matmul %1, %2, %cst {dimension_numbers = #tpu.dot_dimension_numbers<[1], [0], [0], [1], [0, 0, 1, 1], [], []>} : vector<128x256xbf16>, vector<256x256xbf16>, vector<128x256xf32> -> vector<128x256xf32>
    %c0_3 = arith.constant 0 : index
    %c0_4 = arith.constant 0 : index
    %4 = vector.load %arg4[%c0_3, %c0_4] : memref<1x256xf32, #tpu.memory_space<vmem>>, vector<1x256xf32>
    %5 = vector.broadcast %4 : vector<1x256xf32> to vector<128x256xf32>
    %6 = arith.addf %3, %5 : vector<128x256xf32>
    %cst_5 = arith.constant 5.000000e-01 : f32
    %7 = vector.broadcast %cst_5 : f32 to vector<128x256xf32>
    %8 = arith.mulf %7, %6 : vector<128x256xf32>
    %cst_6 = arith.constant 0.707106769 : f32
    %9 = vector.broadcast %cst_6 : f32 to vector<128x256xf32>
    %10 = arith.mulf %6, %9 : vector<128x256xf32>
    %11 = math.erf %10 : vector<128x256xf32>
    %cst_7 = arith.constant 1.000000e+00 : f32
    %12 = vector.broadcast %cst_7 : f32 to vector<128x256xf32>
    %13 = arith.addf %12, %11 : vector<128x256xf32>
    %14 = arith.mulf %8, %13 : vector<128x256xf32>
    %c0_8 = arith.constant 0 : index
    %15 = memref.load %arg1[%c0_8] : memref<2xf32, #tpu.memory_space<smem>>
    %c1 = arith.constant 1 : index
    %16 = memref.load %arg1[%c1] : memref<2xf32, #tpu.memory_space<smem>>
    %17 = vector.broadcast %15 : f32 to vector<128x256xf32>
    %18 = arith.subf %14, %17 : vector<128x256xf32>
    %19 = vector.broadcast %16 : f32 to vector<128x256xf32>
    %20 = arith.mulf %18, %19 : vector<128x256xf32>
    %c0_9 = arith.constant 0 : index
    %c0_10 = arith.constant 0 : index
    %21 = vector.load %arg5[%c0_9, %c0_10] : memref<128x256xf32, #tpu.memory_space<vmem>>, vector<128x256xf32>
    tpu.vector_store %arg5[%c0_9, %c0_10], %20 {strides = array<i32>} : memref<128x256xf32, #tpu.memory_space<vmem>>, vector<128x256xf32>,
    return
  }
  func.func @transform_0(%arg0: i32) -> i32 {
    %c0_i32 = arith.constant 0 : i32
    %c0_i32_0 = arith.constant 0 : i32
    return %c0_i32 : i32
  }
  func.func @transform_1(%arg0: i32) -> (i32, i32) {
    %c0_i32 = arith.constant 0 : i32
    %c0_i32_0 = arith.constant 0 : i32
    return %arg0, %c0_i32 : i32, i32
  }
  func.func @transform_2(%arg0: i32) -> (i32, i32) {
    %c0_i32 = arith.constant 0 : i32
    %c0_i32_0 = arith.constant 0 : i32
    %c0_i32_1 = arith.constant 0 : i32
    return %c0_i32, %c0_i32_0 : i32, i32
  }
  func.func @transform_3(%arg0: i32) -> (i32, i32) {
    %c0_i32 = arith.constant 0 : i32
    %c0_i32_0 = arith.constant 0 : i32
    %c0_i32_1 = arith.constant 0 : i32
    return %c0_i32, %c0_i32_0 : i32, i32
  }
  func.func @transform_4(%arg0: i32) -> (i32, i32) {
    %c0_i32 = arith.constant 0 : i32
    %c0_i32_0 = arith.constant 0 : i32
    return %arg0, %c0_i32 : i32, i32
  }
}

</mosaic_0001>

<bundles_post_ra>
// kernel: classification_layer.3
= control target key start
LH: loop header
LB: loop body
LE: loop exit
PB: predicated region body
PF: predicated region fallthrough
CT: control target
= control target key end

     0   :  { %9 = vsyncpa [#allocation4], 0  ;;  %s1803_s0 = inlined_call_operand.vmem [shape: f32[2], index: 0, kind: input, shape index: {}]   ;;  %s1804_s1 = inlined_call_operand.vmem [shape: f32[256,256], index: 1, kind: input, shape index: {}]   ;;  %s1805_s2 = inlined_call_operand.vmem [shape: bf16[256,256], index: 2, kind: input, shape index: {}]   ;;  %s1806_s3 = inlined_call_operand.vmem [shape: f32[1,256], index: 3, kind: input, shape index: {}]   ;;  %s1807_s4 = inlined_call_operand.hbm [shape: f32[256,256], index: 4, kind: output, shape index: {}]  }
   0x1   :  { %10 = vsyncpa [#allocation3], 0 }
   0x2   :  { %12 = vsyncpa [#allocation3 + $0x1], 0  ;;  %s1290_s15 = smov 0   ;;  %s1292_s16 = smov 0  }
   0x3   :  { %s1294_s17 = smov 0   ;;  %s1296_s18 = smov 0  }
   0x4 LB: > { %s1311_s19 = sadd.s32 4294967295, %s1259_s18   ;;  %s930_s20 = sadd.s32 4294967294, %s1259_s18   ;;  %s1259_s18 = sphi %s1296_s18, %s1814_s18   ;;  %s1255_s17 = sphi %s1294_s17, %s1813_s17   ;;  %s1251_s16 = sphi %s1292_s16, %s1812_s16   ;;  %s1247_s15 = sphi %s1290_s15, %s1811_s15  }
   0x5   : > { %s1315_s21 = sadd.s32 1, %s1259_s18   ;;  %s114_s22 = sadd.s32 1, %s1255_s17 }
   0x6   : > { %s111_s23 = ssub.s32 %s1259_s18, %s1315_s21  ;;  %p124_p0 = scmp.ne.s32.totalorder %s1255_s17, %s1251_s16 }
   0x7   : > { %p112_p1 = scmp.eq.s32.totalorder %s111_s23, 0  ;;  %p125_p2 = scmp.eq.s32.totalorder %s1311_s19, 1 }
   0x8   : > { %p130_p3 = scmp.ne.s32.totalorder %s1251_s16, %s1247_s15  ;;  %p131_p4 = scmp.eq.s32.totalorder %s930_s20, 1 }
   0x9   : > { %s1326_s24 = scalar_select %p112_p1, %s1255_s17, %s114_s22  }
   0xa   : > { %p1328_p5 = por %p125_p2, %p124_p0  ;;  %p1332_p6 = por %p131_p4, %p130_p3 }
   0xb   : > { %p931_p7 = scmp.ge.s32.totalorder %s1259_s18, 1  ;;  %p138_p8 = scmp.lt.s32.totalorder %s1259_s18, 3 }
   0xc   : > { %p1028_p9 = scmp.eq.s32.totalorder %s1311_s19, 0  ;;  %s151_s30 = sshll.u32 %s1803_s0, 4  ;;  %s152_s30 = int_to_ptr.vmem [resolvable:$true] %s151_s30 }
   0xd   : > { %p1339_p10 = pnand %p931_p7, %p138_p8  ;;  %s1178_s5 = scalar_lea.vmem %s152_s30, 16 }
   0xe   : > { %p1179_p13 = scmp.ne.s32.totalorder %s152_s30, %s1178_s5  ;;  %p1186_p3 = scmp.lt.s32.totalorder %s152_s30, %s152_s30 }
   0xf   : > { %p1020_p11 = pneg %p1339_p10  ;;  %p1187_p4 = scmp.lt.s32.totalorder %s1178_s5, %s1178_s5 }
  0x11   : > { %p1021_p12 = pnand %p1028_p9, %p1020_p11  ;;  %p1188_p7 = por %p1187_p4, %p1186_p3 }
  0x13   : > { %p1180_p0 = pneg %p1021_p12 }
  0x15   : > { %p1181_p1 = pnand %p1180_p0, %p1179_p13 }
  0x17   : > { %p1182_p2 = pneg %p1181_p1 }
  0x19   : > { %p1189_p8 = pnand %p1188_p7, %p1182_p2 }
  0x1b   : > { %1192 = shalt.err (!%p1189_p8)
}
  0x1c   : > { %s1261_s6 = smov [#allocation2]   ;;  %180 = sbr.rel (%p1339_p10) target bundleno = 405 (0x195), region = 36 }
  0x1d   : > { %1023 = dma.vmem_to_smem (!%p1021_p12), %s152_s30, 16, %s1261_s6, [#allocation4]  }
  0x23   : > { %1238 = dma.done.wait (%p1028_p9), [#allocation4], 16  }
  0x24   : > { %1240 = vsyncadd (%p1028_p9), [#allocation4], 4294967280 }
  0x25   : > { %186 = sfence }
  0x26   : > { %v1066_v0 = vld [vmem:[%s1805_s2 + $0x4] ss:$8 sps:$4 sm:$0xff]   ;;  %v1068_v1 = vld [vmem:[%s1805_s2] ss:$8 sps:$4 sm:$0xff]   ;;  %v1069_v2 = vld [vmem:[%s1805_s2 + $0x14] ss:$8 sps:$4 sm:$0xff]  }
  0x27   : > { %468 = vmatprep.subr.bf16.mxu0 %v1066_v0  ;;  %982 = vmatprep.subr.bf16.mxu1 %v1066_v0  ;;  %v1071_v3 = vld [vmem:[%s1805_s2 + $0x10] ss:$8 sps:$4 sm:$0xff]   ;;  %v1072_v4 = vld [vmem:[%s1805_s2 + $0x24] ss:$8 sps:$4 sm:$0xff]   ;;  %s937_s23 = sshll.u32 %s1311_s19, 4  ;;  %s741_s12 = sld [smem:[#allocation2]] }
  0x28   : > { %469 = vmatpush1.bf16.msra.mxu0 %v1068_v1  ;;  %998 = vmatpush1.bf16.msra.mxu1 %v1068_v1  ;;  %v1074_v5 = vld [vmem:[%s1805_s2 + $0x20] ss:$8 sps:$4 sm:$0xff]   ;;  %p209_p9 = scmp.lt.s32.totalorder %s937_s23, 31  ;;  %v1075_v6 = vld [vmem:[%s1805_s2 + $0x34] ss:$8 sps:$4 sm:$0xff]   ;;  %s972_s13 = sld [smem:[#allocation2 + $0x1]] }
  0x29   : > { %470 = vmatprep.subr.bf16.mxu0 %v1069_v2  ;;  %983 = vmatprep.subr.bf16.mxu1 %v1069_v2  ;;  %v1077_v7 = vld [vmem:[%s1805_s2 + $0x30] ss:$8 sps:$4 sm:$0xff]   ;;  %v1078_v8 = vld [vmem:[%s1805_s2 + $0x44] ss:$8 sps:$4 sm:$0xff]   ;;  %v1080_v9 = vld [vmem:[%s1805_s2 + $0x40] ss:$8 sps:$4 sm:$0xff]  }
  0x2a   : > { %s1816_s23 = smov (!%p209_p9, %s937_s23), 31  ;;  %v1081_v10 = vld [vmem:[%s1805_s2 + $0x54] ss:$8 sps:$4 sm:$0xff]   ;;  %v1083_v11 = vld [vmem:[%s1805_s2 + $0x50] ss:$8 sps:$4 sm:$0xff]   ;;  %s981_s27 = sshll.u32 %s1311_s19, 12 }
  0x2b   : > { %s979_s11 = sshll.u32 %s1816_s23, 4  ;;  %v1084_v12 = vld [vmem:[%s1805_s2 + $0x64] ss:$8 sps:$4 sm:$0xff]   ;;  %v1086_v18 = vld [vmem:[%s1805_s2 + $0x60] ss:$8 sps:$4 sm:$0xff]   ;;  %s1754_s30 = scalar_lea.hbm %s1807_s4, %s981_s27 }
  0x2c   : > { %471 = vmatpush1.bf16.msra.mxu0 %v1071_v3  ;;  %999 = vmatpush1.bf16.msra.mxu1 %v1071_v3  ;;  %s1393_s22 = scalar_lea.vmem %s1804_s1, %s979_s11  ;;  %v1087_v20 = vld [vmem:[%s1805_s2 + $0x74] ss:$8 sps:$4 sm:$0xff]   ;;  %v1089_v21 = vld [vmem:[%s1805_s2 + $0x70] ss:$8 sps:$4 sm:$0xff]   ;;  %v1090_v22 = vld [vmem:[%s1805_s2 + $0x84] ss:$8 sps:$4 sm:$0xff]  }
  0x2d   : > { %472 = vmatprep.subr.bf16.mxu0 %v1072_v4  ;;  %984 = vmatprep.subr.bf16.mxu1 %v1072_v4  ;;  %v217_v13 = vld [vmem:[%s1393_s22 + $0x8] sm:$0xff]  ;;  %v219_v14 = vld [vmem:[%s1393_s22 + $0x18] sm:$0xff]  ;;  %v216_v38 = vld [vmem:[%s1393_s22] sm:$0xff]  ;;  %s1262_s6 = smov [#allocation5]  }
  0x2e   : > { %v249_v15 = vpack.c.bf16 %v219_v14, %v217_v13  ;;  %v233_v16 = vld [vmem:[%s1393_s22 + $0x88] sm:$0xff]  ;;  %v235_v17 = vld [vmem:[%s1393_s22 + $0x98] sm:$0xff]  ;;  %v218_v39 = vld [vmem:[%s1393_s22 + $0x10] sm:$0xff]  ;;  %s1197_s7 = sshll.u32 %s1262_s6, 4  ;;  %s1198_s7 = int_to_ptr.vmem [resolvable:$false] %s1197_s7 }
  0x2f   : > { %v257_v19 = vpack.c.bf16 %v235_v17, %v233_v16  ;;  %v1092_v23 = vld [vmem:[%s1805_s2 + $0x80] ss:$8 sps:$4 sm:$0xff]   ;;  %v1093_v24 = vld [vmem:[%s1805_s2 + $0x94] ss:$8 sps:$4 sm:$0xff]   ;;  %v1095_v25 = vld [vmem:[%s1805_s2 + $0x90] ss:$8 sps:$4 sm:$0xff]   ;;  %v248_v46 = vpack.c.bf16 %v218_v39, %v216_v38  ;;  %v298_v16 = vlaneseq }
  0x30   : > { %473 = vmatpush1.bf16.msra.mxu0 %v1074_v5  ;;  %1000 = vmatpush1.bf16.msra.mxu1 %v1074_v5  ;;  %v1096_v26 = vld [vmem:[%s1805_s2 + $0xa4] ss:$8 sps:$4 sm:$0xff]   ;;  %v1098_v27 = vld [vmem:[%s1805_s2 + $0xa0] ss:$8 sps:$4 sm:$0xff]   ;;  %v1099_v28 = vld [vmem:[%s1805_s2 + $0xb4] ss:$8 sps:$4 sm:$0xff]  }
  0x31   : > { %474 = vmatprep.subr.bf16.mxu0 %v1075_v6  ;;  %985 = vmatprep.subr.bf16.mxu1 %v1075_v6  ;;  %v1101_v29 = vld [vmem:[%s1805_s2 + $0xb0] ss:$8 sps:$4 sm:$0xff]   ;;  %v1102_v30 = vld [vmem:[%s1805_s2 + $0xc4] ss:$8 sps:$4 sm:$0xff]   ;;  %v1104_v31 = vld [vmem:[%s1805_s2 + $0xc0] ss:$8 sps:$4 sm:$0xff]  }
  0x32   : > { %500 = vmatprep.mubr.bf16.mxu0 %v249_v15  ;;  %540 = vmatprep.mubr.bf16.mxu1 %v257_v19  ;;  %v1105_v32 = vld [vmem:[%s1805_s2 + $0xd4] ss:$8 sps:$4 sm:$0xff]   ;;  %v1107_v33 = vld [vmem:[%s1805_s2 + $0xd0] ss:$8 sps:$4 sm:$0xff]   ;;  %v1108_v34 = vld [vmem:[%s1805_s2 + $0xe4] ss:$8 sps:$4 sm:$0xff]  }
  0x33   : > { %v1110_v35 = vld [vmem:[%s1805_s2 + $0xe0] ss:$8 sps:$4 sm:$0xff]   ;;  %v1111_v36 = vld [vmem:[%s1805_s2 + $0xf4] ss:$8 sps:$4 sm:$0xff]   ;;  %v1113_v37 = vld [vmem:[%s1805_s2 + $0xf0] ss:$8 sps:$4 sm:$0xff]  }
  0x34   : > { %475 = vmatpush1.bf16.msra.mxu0 %v1077_v7  ;;  %1001 = vmatpush1.bf16.msra.mxu1 %v1077_v7  ;;  %v232_v40 = vld [vmem:[%s1393_s22 + $0x80] sm:$0xff]  ;;  %v234_v41 = vld [vmem:[%s1393_s22 + $0x90] sm:$0xff]  ;;  %v221_v42 = vld [vmem:[%s1393_s22 + $0x28] sm:$0xff]  ;;  %v299_v17 = vshrl.u32 %v298_v16, 7  ;;  %s1199_s8 = scalar_lea.vmem %s1198_s7, 8192 }
  0x35   : > { %476 = vmatprep.subr.bf16.mxu0 %v1078_v8  ;;  %986 = vmatprep.subr.bf16.mxu1 %v1078_v8  ;;  %v223_v43 = vld [vmem:[%s1393_s22 + $0x38] sm:$0xff]  ;;  %v237_v44 = vld [vmem:[%s1393_s22 + $0xa8] sm:$0xff]  ;;  %v256_v47 = vpack.c.bf16 %v234_v41, %v232_v40  ;;  %v220_v50 = vld [vmem:[%s1393_s22 + $0x20] sm:$0xff] }
  0x36   : > { %v239_v45 = vld [vmem:[%s1393_s22 + $0xb8] sm:$0xff]  ;;  %v251_v48 = vpack.c.bf16 %v223_v43, %v221_v42  ;;  %v222_v51 = vld [vmem:[%s1393_s22 + $0x30] sm:$0xff]  ;;  %v236_v52 = vld [vmem:[%s1393_s22 + $0xa0] sm:$0xff]  ;;  %v1505_v42 = vstv %s972_s13 }
  0x37   : > { %v259_v49 = vpack.c.bf16 %v239_v45, %v237_v44  ;;  %v238_v53 = vld [vmem:[%s1393_s22 + $0xb0] sm:$0xff]  ;;  %v225_v54 = vld [vmem:[%s1393_s22 + $0x48] sm:$0xff]  ;;  %v227_v55 = vld [vmem:[%s1393_s22 + $0x58] sm:$0xff]  ;;  %v250_v58 = vpack.c.bf16 %v222_v51, %v220_v50 }
  0x38   : > { %477 = vmatpush1.bf16.msra.mxu0 %v1080_v9  ;;  %1002 = vmatpush1.bf16.msra.mxu1 %v1080_v9  ;;  %v241_v56 = vld [vmem:[%s1393_s22 + $0xc8] sm:$0xff]  ;;  %v243_v57 = vld [vmem:[%s1393_s22 + $0xd8] sm:$0xff]  ;;  %v258_v59 = vpack.c.bf16 %v238_v53, %v236_v52  ;;  %v253_v60 = vpack.c.bf16 %v227_v55, %v225_v54  ;;  %v224_v62 = vld [vmem:[%s1393_s22 + $0x40] sm:$0xff] }
  0x39   : > { %478 = vmatprep.subr.bf16.mxu0 %v1081_v10  ;;  %987 = vmatprep.subr.bf16.mxu1 %v1081_v10  ;;  %v261_v61 = vpack.c.bf16 %v243_v57, %v241_v56  ;;  %v226_v63 = vld [vmem:[%s1393_s22 + $0x50] sm:$0xff]  ;;  %v240_v0 = vld [vmem:[%s1393_s22 + $0xc0] sm:$0xff]  ;;  %v229_v2 = vld [vmem:[%s1393_s22 + $0x68] sm:$0xff] }
  0x3a   : > { %v242_v1 = vld [vmem:[%s1393_s22 + $0xd0] sm:$0xff]  ;;  %v231_v3 = vld [vmem:[%s1393_s22 + $0x78] sm:$0xff]  ;;  %v245_v4 = vld [vmem:[%s1393_s22 + $0xe8] sm:$0xff]  ;;  %v252_v6 = vpack.c.bf16 %v226_v63, %v224_v62 }
  0x3b   : > { %v247_v5 = vld [vmem:[%s1393_s22 + $0xf8] sm:$0xff]  ;;  %v260_v7 = vpack.c.bf16 %v242_v1, %v240_v0  ;;  %v255_v8 = vpack.c.bf16 %v231_v3, %v229_v2  ;;  %v228_v10 = vld [vmem:[%s1393_s22 + $0x60] sm:$0xff]  ;;  %v246_v13 = vld [vmem:[%s1393_s22 + $0xf0] sm:$0xff] }
  0x3c   : > { %479 = vmatpush1.bf16.msra.mxu0 %v1083_v11  ;;  %1003 = vmatpush1.bf16.msra.mxu1 %v1083_v11  ;;  %v263_v9 = vpack.c.bf16 %v247_v5, %v245_v4  ;;  %v230_v11 = vld [vmem:[%s1393_s22 + $0x70] sm:$0xff]  ;;  %v296_v19 = vld [vmem:[%s1806_s3] sm:$0x3] }
  0x3d   : > { %480 = vmatprep.subr.bf16.mxu0 %v1084_v12  ;;  %988 = vmatprep.subr.bf16.mxu1 %v1084_v12  ;;  %v244_v12 = vld [vmem:[%s1393_s22 + $0xe0] sm:$0xff]  ;;  %v254_v14 = vpack.c.bf16 %v230_v11, %v228_v10  ;;  %s205_s22 = sand.u32 1, %s1251_s16  }
  0x3e   : > { %v262_v15 = vpack.c.bf16 %v246_v13, %v244_v12  ;;  %s1554_s14 = sshll.u32 %s205_s22, 8  ;;  %s1762_s19 = scalar_lea.sflag [#allocation3], %s205_s22 }
  0x3f   : > { %s1581_s20 = scalar_lea.vmem [#allocation5], %s1554_s14 }
  0x40   : > { %481 = vmatpush1.bf16.msra.mxu0 %v1086_v18  ;;  %1004 = vmatpush1.bf16.msra.mxu1 %v1086_v18  ;;  %v300_v18 = vsub.s32 0, %v299_v17  ;;  %s856_s28 = sshll.u32 %s1581_s20, 4  ;;  %s1756_s28 = int_to_ptr.vmem [resolvable:$true] %s856_s28 }
  0x41   : > { %482 = vmatprep.subr.bf16.mxu0 %v1087_v20  ;;  %989 = vmatprep.subr.bf16.mxu1 %v1087_v20  ;;  %v304_v20 = vsub.s32 1, %v299_v17  ;;  %s1193_s5 = scalar_lea.vmem %s1756_s28, 4096  ;;  %p1200_p13 = scmp.lt.s32.totalorder %s1756_s28, %s1198_s7 }
  0x42   : > { %p1194_p10 = scmp.ne.s32.totalorder %s1756_s28, %s1193_s5  ;;  %p1201_p0 = scmp.lt.s32.totalorder %s1199_s8, %s1193_s5 }
  0x44   : > { %483 = vmatpush1.bf16.msra.mxu0 %v1089_v21  ;;  %1005 = vmatpush1.bf16.msra.mxu1 %v1089_v21  ;;  %v1493_v21 = vrot.slane %v296_v19, %v300_v18  ;;  %p1195_p11 = pnand %p1194_p10, %p1328_p5  ;;  %p1202_p1 = por %p1201_p0, %p1200_p13 }
  0x45   : > { %484 = vmatprep.subr.bf16.mxu0 %v1090_v22  ;;  %990 = vmatprep.subr.bf16.mxu1 %v1090_v22  ;;  %v1495_v22 = vrot.slane %v296_v19, %v304_v20 }
  0x46   : > { %p1196_p12 = pneg %p1195_p11 }
  0x48   : > { %485 = vmatpush1.bf16.msra.mxu0 %v1092_v23  ;;  %1006 = vmatpush1.bf16.msra.mxu1 %v1092_v23  ;;  %p1203_p2 = pnand %p1202_p1, %p1196_p12 }
  0x49   : > { %486 = vmatprep.subr.bf16.mxu0 %v1093_v24  ;;  %991 = vmatprep.subr.bf16.mxu1 %v1093_v24 }
  0x4c   : > { %487 = vmatpush1.bf16.msra.mxu0 %v1095_v25  ;;  %1007 = vmatpush1.bf16.msra.mxu1 %v1095_v25 }
  0x4d   : > { %488 = vmatprep.subr.bf16.mxu0 %v1096_v26  ;;  %992 = vmatprep.subr.bf16.mxu1 %v1096_v26 }
  0x50   : > { %489 = vmatpush1.bf16.msra.mxu0 %v1098_v27  ;;  %1008 = vmatpush1.bf16.msra.mxu1 %v1098_v27 }
  0x51   : > { %490 = vmatprep.subr.bf16.mxu0 %v1099_v28  ;;  %993 = vmatprep.subr.bf16.mxu1 %v1099_v28 }
  0x54   : > { %491 = vmatpush1.bf16.msra.mxu0 %v1101_v29  ;;  %1009 = vmatpush1.bf16.msra.mxu1 %v1101_v29 }
  0x55   : > { %492 = vmatprep.subr.bf16.mxu0 %v1102_v30  ;;  %994 = vmatprep.subr.bf16.mxu1 %v1102_v30 }
  0x58   : > { %493 = vmatpush1.bf16.msra.mxu0 %v1104_v31  ;;  %1010 = vmatpush1.bf16.msra.mxu1 %v1104_v31 }
  0x59   : > { %494 = vmatprep.subr.bf16.mxu0 %v1105_v32  ;;  %995 = vmatprep.subr.bf16.mxu1 %v1105_v32 }
  0x5c   : > { %495 = vmatpush1.bf16.msra.mxu0 %v1107_v33  ;;  %1011 = vmatpush1.bf16.msra.mxu1 %v1107_v33 }
  0x5d   : > { %496 = vmatprep.subr.bf16.mxu0 %v1108_v34  ;;  %996 = vmatprep.subr.bf16.mxu1 %v1108_v34 }
  0x60   : > { %497 = vmatpush1.bf16.msra.mxu0 %v1110_v35  ;;  %1012 = vmatpush1.bf16.msra.mxu1 %v1110_v35 }
  0x61   : > { %498 = vmatprep.subr.bf16.mxu0 %v1111_v36  ;;  %997 = vmatprep.subr.bf16.mxu1 %v1111_v36 }
  0x64   : > { %499 = vmatpush1.bf16.msra.mxu0 %v1113_v37  ;;  %1013 = vmatpush1.bf16.msra.mxu1 %v1113_v37  ;;  %v1501_v37 = vstv %s741_s12 }
  0x67   : > { %501 = vmatmul.mubr.bf16.vlgmr.msra.gmra.mrb[0].mxu0 %v248_v46  ;;  %541 = vmatmul.mubr.bf16.vlgmr.msra.gmra.mrb[0].mxu1 %v256_v47 }
  0x68   : > { %510 = vmatprep.mubr.bf16.mxu0 %v251_v48  ;;  %550 = vmatprep.mubr.bf16.mxu1 %v259_v49 }
  0x6f   : > { %511 = vmatmul.mubr.bf16.gmra.mrb[4].mxu0 %v250_v58  ;;  %551 = vmatmul.mubr.bf16.gmra.mrb[4].mxu1 %v258_v59 }
  0x70   : > { %520 = vmatprep.mubr.bf16.mxu0 %v253_v60  ;;  %560 = vmatprep.mubr.bf16.mxu1 %v261_v61 }
  0x77   : > { %521 = vmatmul.mubr.bf16.gmra.mrb[8].mxu0 %v252_v6  ;;  %561 = vmatmul.mubr.bf16.gmra.mrb[8].mxu1 %v260_v7 }
  0x78   : > { %530 = vmatprep.mubr.bf16.mxu0 %v255_v8  ;;  %570 = vmatprep.mubr.bf16.mxu1 %v263_v9 }
  0x7f   : > { %531 = vmatmul.mubr.bf16.gmra.mrb[12].mxu0 %v254_v14  ;;  %571 = vmatmul.mubr.bf16.gmra.mrb[12].mxu1 %v262_v15 }
 0x13a   : > { %v502_v23 = vpop.f32.mrb[0].mxu0  ;;  %v542_v24 = vpop.f32.mrb[0].mxu1 }
 0x13b   : > { %v503_v25 = vadd.f32 %v502_v23, %v1493_v21  ;;  %v543_v26 = vadd.f32 %v542_v24, %v1493_v21  ;;  %v504_v27 = vpop.f32.mrb[1].mxu0  ;;  %v544_v28 = vpop.f32.mrb[1].mxu1 }
 0x13c   : > { %v505_v29 = vadd.f32 %v504_v27, %v1495_v22  ;;  %v545_v30 = vadd.f32 %v544_v28, %v1495_v22  ;;  %v506_v31 = vpop.f32.mrb[2].mxu0  ;;  %v546_v32 = vpop.f32.mrb[2].mxu1 }
 0x13d   : > { %v613_v33 = vmul.f32 0.70710677, %v503_v25  ;;  %v629_v34 = vmul.f32 0.70710677, %v543_v26  ;;  %v507_v38 = vadd.f32 %v506_v31, %v1493_v21  ;;  %v547_v39 = vadd.f32 %v546_v32, %v1493_v21  ;;  %v508_v40 = vpop.f32.mrb[3].mxu0  ;;  %v548_v41 = vpop.f32.mrb[3].mxu1 }
 0x13e   : > { %v614_v35 = vmul.f32 0.70710677, %v505_v29  ;;  %v630_v36 = vmul.f32 0.70710677, %v545_v30  ;;  %v509_v43 = vadd.f32 %v508_v40, %v1495_v22  ;;  %v549_v44 = vadd.f32 %v548_v41, %v1495_v22 }
 0x13f   : > { %1114 = verf.f32 %v613_v33  ;;  %v581_v45 = vmul.f32 0.5, %v503_v25  ;;  %v1509_v46 = vmul.f32 0.5, %v543_v26  ;;  %v615_v47 = vmul.f32 0.70710677, %v507_v38 }
 0x140   : > { %1116 = verf.f32 %v629_v34  ;;  %v1511_v48 = vmul.f32 0.5, %v505_v29  ;;  %v631_v49 = vmul.f32 0.70710677, %v547_v39  ;;  %v616_v50 = vmul.f32 0.70710677, %v509_v43 }
 0x141   : > { %1118 = verf.f32 %v614_v35  ;;  %v1513_v52 = vmul.f32 0.5, %v545_v30  ;;  %v632_v53 = vmul.f32 0.70710677, %v549_v44  ;;  %v1516_v57 = vmul.f32 0.5, %v507_v38 }
 0x142   : > { %1120 = verf.f32 %v630_v36  ;;  %v512_v51 = vpop.f32.mrb[4].mxu0  ;;  %v552_v55 = vpop.f32.mrb[4].mxu1  ;;  %v1520_v62 = vmul.f32 0.5, %v547_v39  ;;  %v1523_v3 = vmul.f32 0.5, %v509_v43  ;;  %v1525_v4 = vmul.f32 0.5, %v549_v44 }
 0x143   : > { %1122 = verf.f32 %v615_v47  ;;  %v513_v54 = vadd.f32 %v512_v51, %v1493_v21  ;;  %v514_v56 = vpop.f32.mrb[5].mxu0  ;;  %v553_v58 = vadd.f32 %v552_v55, %v1493_v21  ;;  %v554_v60 = vpop.f32.mrb[5].mxu1 }
 0x144   : > { %1124 = verf.f32 %v631_v49  ;;  %v515_v59 = vadd.f32 %v514_v56, %v1495_v22  ;;  %v516_v61 = vpop.f32.mrb[6].mxu0  ;;  %v555_v0 = vadd.f32 %v554_v60, %v1495_v22  ;;  %v556_v1 = vpop.f32.mrb[6].mxu1 }
 0x145   : > { %1126 = verf.f32 %v616_v50  ;;  %v617_v63 = vmul.f32 0.70710677, %v513_v54  ;;  %v518_v2 = vpop.f32.mrb[7].mxu0  ;;  %v633_v5 = vmul.f32 0.70710677, %v553_v58  ;;  %v558_v6 = vpop.f32.mrb[7].mxu1  ;;  %v517_v10 = vadd.f32 %v516_v61, %v1493_v21 }
 0x146   : > { %1128 = verf.f32 %v632_v53  ;;  %v1527_v7 = vmul.f32 0.5, %v513_v54  ;;  %v618_v8 = vmul.f32 0.70710677, %v515_v59  ;;  %v634_v9 = vmul.f32 0.70710677, %v555_v0 }
 0x147   : > { %1130 = verf.f32 %v617_v63  ;;  %v557_v11 = vadd.f32 %v556_v1, %v1493_v21  ;;  %v519_v12 = vadd.f32 %v518_v2, %v1495_v22  ;;  %v1533_v14 = vmul.f32 0.5, %v553_v58 }
 0x148   : > { %1132 = verf.f32 %v633_v5  ;;  %v1535_v15 = vmul.f32 0.5, %v515_v59  ;;  %v1537_v16 = vmul.f32 0.5, %v555_v0  ;;  %v619_v19 = vmul.f32 0.70710677, %v517_v10 }
 0x149   : > { %v1115_v13 = vpop.eup %1114  ;;  %1134 = verf.f32 %v618_v8  ;;  %v1540_v20 = vadd.f32 %v558_v6, %v1495_v22  ;;  %v1546_v27 = vmul.f32 0.5, %v517_v10  ;;  %v1548_v28 = vmul.f32 0.5, %v557_v11 }
 0x14a   : > { %v1117_v17 = vpop.eup %1116  ;;  %v677_v18 = vadd.f32 1.0, %v1115_v13  ;;  %1136 = verf.f32 %v634_v9  ;;  %v1542_v23 = vpop.f32.mrb[8].mxu0  ;;  %v635_v29 = vmul.f32 0.70710677, %v557_v11  ;;  %v620_v34 = vmul.f32 0.70710677, %v519_v12 }
 0x14b   : > { %v1544_v24 = vpop.f32.mrb[8].mxu1  ;;  %v1119_v25 = vpop.eup %1118  ;;  %v693_v26 = vadd.f32 1.0, %v1117_v17  ;;  %1138 = verf.f32 %v619_v19  ;;  %v1561_v41 = vmul.f32 0.5, %v519_v12  ;;  %v636_v56 = vmul.f32 0.70710677, %v1540_v20 }
 0x14c   : > { %v1550_v30 = vpop.f32.mrb[9].mxu0  ;;  %v1121_v31 = vpop.eup %1120  ;;  %v709_v32 = vmul.f32 %v677_v18, %v581_v45  ;;  %v678_v33 = vadd.f32 1.0, %v1119_v25  ;;  %1140 = verf.f32 %v635_v29 }
 0x14d   : > { %v1556_v35 = vpop.f32.mrb[9].mxu1  ;;  %v1558_v36 = vpop.f32.mrb[10].mxu0  ;;  %v725_v39 = vmul.f32 %v693_v26, %v1509_v46  ;;  %v694_v40 = vadd.f32 1.0, %v1121_v31  ;;  %1142 = verf.f32 %v620_v34 }
 0x14e   : > { %v1123_v38 = vpop.eup %1122  ;;  %v1563_v43 = vpop.f32.mrb[10].mxu1  ;;  %v744_v45 = vsub.f32 %v709_v32, %v1501_v37  ;;  %v710_v49 = vmul.f32 %v678_v33, %v1511_v48  ;;  %1144 = verf.f32 %v636_v56 }
 0x14f   : > { %v1565_v44 = vpop.f32.mrb[11].mxu0  ;;  %v1125_v47 = vpop.eup %1124  ;;  %v679_v50 = vadd.f32 1.0, %v1123_v38  ;;  %v760_v46 = vsub.f32 %v725_v39, %v1501_v37  ;;  %v726_v54 = vmul.f32 %v694_v40, %v1513_v52 }
 0x150   : > { %v1569_v51 = vpop.f32.mrb[11].mxu1  ;;  %v1127_v53 = vpop.eup %1126  ;;  %v695_v55 = vadd.f32 1.0, %v1125_v47  ;;  %v777_v59 = vmul.f32 %v1505_v42, %v744_v45  ;;  %v745_v60 = vsub.f32 %v710_v49, %v1501_v37 }
 0x151   : > { %v1129_v58 = vpop.eup %1128  ;;  %v711_v48 = vmul.f32 %v679_v50, %v1516_v57  ;;  %v680_v61 = vadd.f32 1.0, %v1127_v53  ;;  %v793_v0 = vmul.f32 %v1505_v42, %v760_v46  ;;  %v761_v1 = vsub.f32 %v726_v54, %v1501_v37 }
 0x152   : > { %v1131_v63 = vpop.eup %1130  ;;  %v727_v2 = vmul.f32 %v695_v55, %v1520_v62  ;;  %v696_v5 = vadd.f32 1.0, %v1129_v58  ;;  %809 = vst [vmem:[%s1581_s20] sm:$0xff] %v777_v59  ;;  %v778_v6 = vmul.f32 %v1505_v42, %v745_v60  ;;  %v1587_v10 = vpop.f32.mrb[12].mxu0 }
 0x153   : > { %v1133_v52 = vpop.eup %1132  ;;  %v746_v57 = vsub.f32 %v711_v48, %v1501_v37  ;;  %v712_v8 = vmul.f32 %v680_v61, %v1523_v3  ;;  %v681_v9 = vadd.f32 1.0, %v1131_v63  ;;  %v1589_v11 = vpop.f32.mrb[12].mxu1  ;;  %825 = vst [vmem:[%s1581_s20 + $0x80] sm:$0xff] %v793_v0  ;;  %v794_v12 = vmul.f32 %v1505_v42, %v761_v1 }
 0x154   : > { %v1135_v62 = vpop.eup %1134  ;;  %v762_v13 = vsub.f32 %v727_v2, %v1501_v37  ;;  %v728_v17 = vmul.f32 %v696_v5, %v1525_v4  ;;  %v697_v18 = vadd.f32 1.0, %v1133_v52  ;;  %v1595_v19 = vpop.f32.mrb[13].mxu0  ;;  %810 = vst [vmem:[%s1581_s20 + $0x8] sm:$0xff] %v778_v6 }
 0x155   : > { %v1597_v25 = vpop.f32.mrb[13].mxu1  ;;  %v1137_v3 = vpop.eup %1136  ;;  %v779_v26 = vmul.f32 %v1505_v42, %v746_v57  ;;  %v747_v29 = vsub.f32 %v712_v8, %v1501_v37  ;;  %v713_v31 = vmul.f32 %v681_v9, %v1527_v7  ;;  %v682_v32 = vadd.f32 1.0, %v1135_v62  ;;  %826 = vst [vmem:[%s1581_s20 + $0x88] sm:$0xff] %v794_v12 }
 0x156   : > { %v1603_v33 = vpop.f32.mrb[14].mxu0  ;;  %v1605_v34 = vpop.f32.mrb[14].mxu1  ;;  %v795_v4 = vmul.f32 %v1505_v42, %v762_v13  ;;  %v763_v38 = vsub.f32 %v728_v17, %v1501_v37  ;;  %v729_v39 = vmul.f32 %v697_v18, %v1533_v14  ;;  %v698_v40 = vadd.f32 1.0, %v1137_v3 }
 0x157   : > { %v1611_v47 = vpop.f32.mrb[15].mxu0  ;;  %v1613_v45 = vpop.f32.mrb[15].mxu1  ;;  %811 = vst [vmem:[%s1581_s20 + $0x10] sm:$0xff] %v779_v26  ;;  %v780_v49 = vmul.f32 %v1505_v42, %v747_v29  ;;  %v748_v50 = vsub.f32 %v713_v31, %v1501_v37  ;;  %v714_v53 = vmul.f32 %v682_v32, %v1535_v15  ;;  %v523_v15 = vadd.f32 %v1542_v23, %v1493_v21 }
 0x158   : > { %v1139_v7 = vpop.eup %1138  ;;  %827 = vst [vmem:[%s1581_s20 + $0x90] sm:$0xff] %v795_v4  ;;  %v796_v14 = vmul.f32 %v1505_v42, %v763_v38  ;;  %v764_v54 = vsub.f32 %v729_v39, %v1501_v37  ;;  %v730_v55 = vmul.f32 %v698_v40, %v1537_v16  ;;  %v563_v57 = vadd.f32 %v1544_v24, %v1493_v21 }
 0x159   : > { %v1141_v46 = vpop.eup %1140  ;;  %v683_v58 = vadd.f32 1.0, %v1139_v7  ;;  %812 = vst [vmem:[%s1581_s20 + $0x18] sm:$0xff] %v780_v49  ;;  %v781_v60 = vmul.f32 %v1505_v42, %v748_v50  ;;  %v749_v48 = vsub.f32 %v714_v53, %v1501_v37  ;;  %v621_v5 = vmul.f32 0.70710677, %v523_v15 }
 0x15a   : > { %v1143_v59 = vpop.eup %1142  ;;  %v699_v61 = vadd.f32 1.0, %v1141_v46  ;;  %828 = vst [vmem:[%s1581_s20 + $0x98] sm:$0xff] %v796_v14  ;;  %v797_v56 = vmul.f32 %v1505_v42, %v764_v54  ;;  %v765_v63 = vsub.f32 %v730_v55, %v1501_v37  ;;  %v565_v8 = vadd.f32 %v1556_v35, %v1495_v22 }
 0x15b   : > { %v715_v16 = vmul.f32 %v683_v58, %v1546_v27  ;;  %v684_v0 = vadd.f32 1.0, %v1143_v59  ;;  %813 = vst [vmem:[%s1581_s20 + $0x20] sm:$0xff] %v781_v60  ;;  %v782_v1 = vmul.f32 %v1505_v42, %v749_v48  ;;  %1146 = verf.f32 %v621_v5  ;;  %v1145_v18 = vpop.eup %1144 }
 0x15c   : > { %v731_v2 = vmul.f32 %v699_v61, %v1548_v28  ;;  %829 = vst [vmem:[%s1581_s20 + $0xa0] sm:$0xff] %v797_v56  ;;  %v798_v52 = vmul.f32 %v1505_v42, %v765_v63  ;;  %v525_v28 = vadd.f32 %v1550_v30, %v1495_v22  ;;  %v637_v62 = vmul.f32 0.70710677, %v563_v57 }
 0x15d   : > { %v750_v23 = vsub.f32 %v715_v16, %v1501_v37  ;;  %v716_v6 = vmul.f32 %v684_v0, %v1561_v41  ;;  %814 = vst [vmem:[%s1581_s20 + $0x28] sm:$0xff] %v782_v1  ;;  %v638_v17 = vmul.f32 0.70710677, %v565_v8  ;;  %v527_v30 = vadd.f32 %v1558_v36, %v1493_v21 }
 0x15e   : > { %v766_v27 = vsub.f32 %v731_v2, %v1501_v37  ;;  %830 = vst [vmem:[%s1581_s20 + $0xa8] sm:$0xff] %v798_v52  ;;  %v622_v12 = vmul.f32 0.70710677, %v525_v28  ;;  %1148 = verf.f32 %v637_v62  ;;  %v567_v35 = vadd.f32 %v1563_v43, %v1493_v21 }
 0x15f   : > { %v783_v9 = vmul.f32 %v1505_v42, %v750_v23  ;;  %v751_v41 = vsub.f32 %v716_v6, %v1501_v37  ;;  %v529_v3 = vadd.f32 %v1565_v44, %v1495_v22  ;;  %v569_v26 = vadd.f32 %v1569_v51, %v1495_v22 }
 0x160   : > { %v799_v24 = vmul.f32 %v1505_v42, %v766_v27  ;;  %1150 = verf.f32 %v622_v12  ;;  %v604_v29 = vmul.f32 0.5, %v1540_v20  ;;  %v700_v31 = vadd.f32 1.0, %v1145_v18 }
 0x161   : > { %815 = vst [vmem:[%s1581_s20 + $0x30] sm:$0xff] %v783_v9  ;;  %v784_v13 = vmul.f32 %v1505_v42, %v751_v41  ;;  %1152 = verf.f32 %v638_v17  ;;  %v623_v32 = vmul.f32 0.70710677, %v527_v30  ;;  %v589_v4 = vmul.f32 0.5, %v523_v15 }
 0x162   : > { %831 = vst [vmem:[%s1581_s20 + $0xb0] sm:$0xff] %v799_v24  ;;  %v605_v36 = vmul.f32 0.5, %v563_v57  ;;  %v639_v38 = vmul.f32 0.70710677, %v567_v35  ;;  %v624_v39 = vmul.f32 0.70710677, %v529_v3  ;;  %v732_v40 = vmul.f32 %v700_v31, %v604_v29 }
 0x163   : > { %816 = vst [vmem:[%s1581_s20 + $0x38] sm:$0xff] %v784_v13  ;;  %v590_v7 = vmul.f32 0.5, %v525_v28  ;;  %1154 = verf.f32 %v623_v32  ;;  %v640_v43 = vmul.f32 0.70710677, %v569_v26  ;;  %v533_v44 = vadd.f32 %v1587_v10, %v1493_v21 }
 0x164   : > { %1156 = verf.f32 %v639_v38  ;;  %v573_v51 = vadd.f32 %v1589_v11, %v1493_v21  ;;  %v535_v20 = vadd.f32 %v1595_v19, %v1495_v22  ;;  %v767_v49 = vsub.f32 %v732_v40, %v1501_v37 }
 0x165   : > { %1158 = verf.f32 %v624_v39  ;;  %v1673_v50 = vadd.f32 %v1597_v25, %v1495_v22  ;;  %v1677_v53 = vadd.f32 %v1603_v33, %v1493_v21  ;;  %v1147_v46 = vpop.eup %1146  ;;  %v606_v10 = vmul.f32 0.5, %v565_v8 }
 0x166   : > { %v591_v14 = vmul.f32 0.5, %v527_v30  ;;  %1160 = verf.f32 %v640_v43  ;;  %v625_v11 = vmul.f32 0.70710677, %v533_v44  ;;  %v800_v54 = vmul.f32 %v1505_v42, %v767_v49 }
 0x167   : > { %v685_v19 = vadd.f32 1.0, %v1147_v46  ;;  %v607_v55 = vmul.f32 0.5, %v567_v35  ;;  %v641_v58 = vmul.f32 0.70710677, %v573_v51  ;;  %v592_v59 = vmul.f32 0.5, %v529_v3 }
 0x168   : > { %1162 = verf.f32 %v625_v11  ;;  %v626_v60 = vmul.f32 0.70710677, %v535_v20  ;;  %v642_v25 = vmul.f32 0.70710677, %v1673_v50  ;;  %v1149_v48 = vpop.eup %1148  ;;  %832 = vst [vmem:[%s1581_s20 + $0xb8] sm:$0xff] %v800_v54  ;;  %v608_v33 = vmul.f32 0.5, %v569_v26 }
 0x169   : > { %v717_v61 = vmul.f32 %v685_v19, %v589_v4  ;;  %1164 = verf.f32 %v641_v58  ;;  %v627_v15 = vmul.f32 0.70710677, %v1677_v53  ;;  %v701_v63 = vadd.f32 1.0, %v1149_v48 }
 0x16a   : > { %v1151_v56 = vpop.eup %1150  ;;  %1166 = verf.f32 %v626_v60  ;;  %v1685_v16 = vadd.f32 %v1605_v34, %v1493_v21  ;;  %v1689_v0 = vadd.f32 %v1611_v47, %v1495_v22  ;;  %v593_v52 = vmul.f32 0.5, %v533_v44 }
 0x16b   : > { %v1153_v1 = vpop.eup %1152  ;;  %v752_v2 = vsub.f32 %v717_v61, %v1501_v37  ;;  %v686_v5 = vadd.f32 1.0, %v1151_v56  ;;  %1168 = verf.f32 %v642_v25  ;;  %v733_v23 = vmul.f32 %v701_v63, %v605_v36 }
 0x16c   : > { %v702_v6 = vadd.f32 1.0, %v1153_v1  ;;  %v609_v57 = vmul.f32 0.5, %v573_v51  ;;  %1170 = verf.f32 %v627_v15  ;;  %v643_v34 = vmul.f32 0.70710677, %v1685_v16 }
 0x16d   : > { %v1155_v27 = vpop.eup %1154  ;;  %v785_v28 = vmul.f32 %v1505_v42, %v752_v2  ;;  %v718_v21 = vmul.f32 %v686_v5, %v590_v7  ;;  %v1696_v47 = vadd.f32 %v1613_v45, %v1495_v22  ;;  %v768_v9 = vsub.f32 %v733_v23, %v1501_v37 }
 0x16e   : > { %v1157_v8 = vpop.eup %1156  ;;  %v734_v41 = vmul.f32 %v702_v6, %v606_v10  ;;  %v687_v62 = vadd.f32 1.0, %v1155_v27  ;;  %v628_v24 = vmul.f32 0.70710677, %v1689_v0  ;;  %v594_v30 = vmul.f32 0.5, %v535_v20 }
 0x16f   : > { %v1159_v12 = vpop.eup %1158  ;;  %817 = vst [vmem:[%s1581_s20 + $0x40] sm:$0xff] %v785_v28  ;;  %v753_v13 = vsub.f32 %v718_v21, %v1501_v37  ;;  %v703_v17 = vadd.f32 1.0, %v1157_v8  ;;  %1172 = verf.f32 %v643_v34  ;;  %v801_v22 = vmul.f32 %v1505_v42, %v768_v9 }
 0x170   : > { %v1161_v18 = vpop.eup %1160  ;;  %v769_v45 = vsub.f32 %v734_v41, %v1501_v37  ;;  %v719_v35 = vmul.f32 %v687_v62, %v591_v14  ;;  %v688_v3 = vadd.f32 1.0, %v1159_v12  ;;  %1174 = verf.f32 %v628_v24 }
 0x171   : > { %v786_v26 = vmul.f32 %v1505_v42, %v753_v13  ;;  %v735_v29 = vmul.f32 %v703_v17, %v607_v55  ;;  %v704_v31 = vadd.f32 1.0, %v1161_v18  ;;  %833 = vst [vmem:[%s1581_s20 + $0xc0] sm:$0xff] %v801_v22  ;;  %v644_v39 = vmul.f32 0.70710677, %v1696_v47 }
 0x172   : > { %v1163_v32 = vpop.eup %1162  ;;  %v802_v4 = vmul.f32 %v1505_v42, %v769_v45  ;;  %v754_v36 = vsub.f32 %v719_v35, %v1501_v37  ;;  %v720_v38 = vmul.f32 %v688_v3, %v592_v59  ;;  %v610_v51 = vmul.f32 0.5, %v1673_v50 }
 0x173   : > { %v1165_v40 = vpop.eup %1164  ;;  %818 = vst [vmem:[%s1581_s20 + $0x48] sm:$0xff] %v786_v26  ;;  %v770_v7 = vsub.f32 %v735_v29, %v1501_v37  ;;  %v736_v43 = vmul.f32 %v704_v31, %v608_v33  ;;  %v689_v44 = vadd.f32 1.0, %v1163_v32  ;;  %1176 = verf.f32 %v644_v39 }
 0x174   : > { %v1167_v20 = vpop.eup %1166  ;;  %834 = vst [vmem:[%s1581_s20 + $0xc8] sm:$0xff] %v802_v4  ;;  %v787_v49 = vmul.f32 %v1505_v42, %v754_v36  ;;  %v755_v46 = vsub.f32 %v720_v38, %v1501_v37  ;;  %v705_v10 = vadd.f32 1.0, %v1165_v40  ;;  %v595_v25 = vmul.f32 0.5, %v1677_v53 }
 0x175   : > { %v1169_v14 = vpop.eup %1168  ;;  %v803_v11 = vmul.f32 %v1505_v42, %v770_v7  ;;  %v771_v54 = vsub.f32 %v736_v43, %v1501_v37  ;;  %v721_v19 = vmul.f32 %v689_v44, %v593_v52  ;;  %v690_v55 = vadd.f32 1.0, %v1167_v20 }
 0x176   : > { %v1171_v58 = vpop.eup %1170  ;;  %819 = vst [vmem:[%s1581_s20 + $0x50] sm:$0xff] %v787_v49  ;;  %v788_v50 = vmul.f32 %v1505_v42, %v755_v46  ;;  %v737_v59 = vmul.f32 %v705_v10, %v609_v57  ;;  %v706_v60 = vadd.f32 1.0, %v1169_v14  ;;  %v611_v6 = vmul.f32 0.5, %v1685_v16 }
 0x177   : > { %835 = vst [vmem:[%s1581_s20 + $0xd0] sm:$0xff] %v803_v11  ;;  %v804_v48 = vmul.f32 %v1505_v42, %v771_v54  ;;  %v756_v61 = vsub.f32 %v721_v19, %v1501_v37  ;;  %v722_v33 = vmul.f32 %v690_v55, %v594_v30  ;;  %v691_v15 = vadd.f32 1.0, %v1171_v58 }
 0x178   : > { %820 = vst [vmem:[%s1581_s20 + $0x58] sm:$0xff] %v788_v50  ;;  %v772_v56 = vsub.f32 %v737_v59, %v1501_v37  ;;  %v738_v63 = vmul.f32 %v706_v60, %v610_v51  ;;  %v596_v9 = vmul.f32 0.5, %v1689_v0  ;;  %v612_v13 = vmul.f32 0.5, %v1696_v47 }
 0x179   : > { %v1173_v1 = vpop.eup %1172  ;;  %836 = vst [vmem:[%s1581_s20 + $0xd8] sm:$0xff] %v804_v48  ;;  %v789_v2 = vmul.f32 %v1505_v42, %v756_v61  ;;  %v757_v53 = vsub.f32 %v722_v33, %v1501_v37  ;;  %v723_v5 = vmul.f32 %v691_v15, %v595_v25 }
 0x17a   : > { %v805_v52 = vmul.f32 %v1505_v42, %v772_v56  ;;  %v773_v23 = vsub.f32 %v738_v63, %v1501_v37  ;;  %v707_v57 = vadd.f32 1.0, %v1173_v1  ;;  %v1175_v27 = vpop.eup %1174 }
 0x17b   : > { %821 = vst [vmem:[%s1581_s20 + $0x60] sm:$0xff] %v789_v2  ;;  %v790_v28 = vmul.f32 %v1505_v42, %v757_v53  ;;  %v758_v21 = vsub.f32 %v723_v5, %v1501_v37  ;;  %v692_v41 = vadd.f32 1.0, %v1175_v27 }
 0x17c   : > { %837 = vst [vmem:[%s1581_s20 + $0xe0] sm:$0xff] %v805_v52  ;;  %v806_v34 = vmul.f32 %v1505_v42, %v773_v23  ;;  %v739_v8 = vmul.f32 %v707_v57, %v611_v6 }
 0x17d   : > { %822 = vst [vmem:[%s1581_s20 + $0x68] sm:$0xff] %v790_v28  ;;  %v791_v16 = vmul.f32 %v1505_v42, %v758_v21  ;;  %v1177_v62 = vpop.eup %1176  ;;  %v724_v12 = vmul.f32 %v692_v41, %v596_v9 }
 0x17e   : > { %838 = vst [vmem:[%s1581_s20 + $0xe8] sm:$0xff] %v806_v34  ;;  %v774_v24 = vsub.f32 %v739_v8, %v1501_v37  ;;  %v708_v17 = vadd.f32 1.0, %v1177_v62 }
 0x17f   : > { %823 = vst [vmem:[%s1581_s20 + $0x70] sm:$0xff] %v791_v16  ;;  %v759_v0 = vsub.f32 %v724_v12, %v1501_v37 }
 0x180   : > { %v807_v30 = vmul.f32 %v1505_v42, %v774_v24  ;;  %v740_v18 = vmul.f32 %v708_v17, %v612_v13 }
 0x181   : > { %v792_v22 = vmul.f32 %v1505_v42, %v759_v0 }
 0x182   : > { %839 = vst [vmem:[%s1581_s20 + $0xf0] sm:$0xff] %v807_v30  ;;  %v775_v45 = vsub.f32 %v740_v18, %v1501_v37 }
 0x183   : > { %824 = vst [vmem:[%s1581_s20 + $0x78] sm:$0xff] %v792_v22 }
 0x184   : > { %v808_v47 = vmul.f32 %v1505_v42, %v775_v45 }
 0x186   : > { %840 = vst [vmem:[%s1581_s20 + $0xf8] sm:$0xff] %v808_v47 }
 0x187   : > { %1206 = shalt.err (!%p1203_p2)
}
 0x188   : > { %s1207_s9 = scalar_lea.hbm %s1754_s30, 4096  ;;  %s1211_s12 = scalar_lea.hbm %s1807_s4, 8192 }
 0x189   : > { %p1208_p3 = scmp.ne.s32.totalorder %s1754_s30, %s1207_s9  ;;  %p1212_p8 = scmp.lt.u32.totalorder %s1754_s30, %s1807_s4 }
 0x18a   : > { %p1213_p9 = scmp.lt.u32.totalorder %s1211_s12, %s1207_s9  ;;  %p1215_p11 = scmp.lt.u32.totalorder %s1207_s9, %s1754_s30 }
 0x18b   : > { %p1209_p4 = pnand %p1208_p3, %p1328_p5 }
 0x18c   : > { %p1214_p10 = por %p1213_p9, %p1212_p8 }
 0x18d   : > { %p1210_p7 = pneg %p1209_p4 }
 0x18e   : > { %p1216_p12 = por %p1215_p11, %p1214_p10 }
 0x190   : > { %p1217_p13 = pnand %p1216_p12, %p1210_p7 }
 0x192   : > { %1220 = shalt.err (!%p1217_p13)
}
 0x193   : > { %s1263_s14 = smov 256   ;;  %s1264_s20 = smov 16  }
 0x194   : > { %1018 = dma.vmem_to_hbm [thread:$0]  (%p1328_p5), %s1756_s28, 4096, %s1754_s30, %s1762_s19, %s1263_s14, %s1263_s14, %s1264_s20  }
 0x195 PF: > { %p1030_p0 = scmp.ge.s32.totalorder %s1259_s18, 2  ;;  %s871_s27 = sand.u32 1, %s1247_s15  }
 0x196   : > { %s872_s23 = scalar_lea.sflag [#allocation3], %s871_s27 }
 0x197   : > { %p1025_p1 = pnand %p1030_p0, %p1332_p6 }
 0x199   : > { %1242 = dma.done.wait (!%p1025_p1), %s872_s23, 4096  }
 0x19a   : > { %1244 = vsyncadd (!%p1025_p1), %s872_s23, 4294963200  ;;  %p15_p2 = scmp.ge.s32.totalorder %s1315_s21, 4   ;;  %s1811_s15 = smov %s1251_s16 }
 0x19b   : > { %s1812_s16 = smov %s1255_s17  ;;  %s1813_s17 = smov %s1326_s24 }
 0x19c   : > { %s1814_s18 = smov %s1315_s21  ;;  %17 = sbr.rel (!%p15_p2) target bundleno = 4 (0x4), region = 76 }
 0x1a3   :  { %877 = vsyncpa [#allocation3], 1 }
 0x1a4   :  { %879 = vsyncpa [#allocation3 + $0x1], 1 }
 0x1a5   :  { %880 = vsyncpa [#allocation4], 1 }
 0x1a6   :  { %882 = vsyncpa [#allocation4 + $0x1], 1 }

// kernel: classification_layer.2
= control target key start
LH: loop header
LB: loop body
LE: loop exit
PB: predicated region body
PF: predicated region fallthrough
CT: control target
= control target key end

     0   :  { %s1081_s12 = smov 0   ;;  %s1472_s0 = inlined_call_operand.vmem [shape: f32[256,256], index: 0, kind: input, shape index: {}]   ;;  %s1473_s1 = inlined_call_operand.vmem [shape: bf16[256,256], index: 1, kind: input, shape index: {}]   ;;  %s1474_s2 = inlined_call_operand.vmem [shape: f32[1,256], index: 2, kind: input, shape index: {}]   ;;  %s1475_s3 = inlined_call_operand.vmem [shape: f32[2,2,8,256], index: 3, kind: output, shape index: {}]  }
   0x1 LB: > { %s1087_s13 = sadd.s32 4294967295, %s1059_s12   ;;  %p857_p0 = scmp.ge.s32.totalorder %s1059_s12, 1  ;;  %s1059_s12 = sphi %s1081_s12, %s13_s12  }
   0x2   : > { %p139_p1 = scmp.lt.s32.totalorder %s1059_s12, 3 }
   0x4   : > { %p140_p2 = pnand %p857_p0, %p139_p1 }
   0x5   : > { %v941_v0 = vld [vmem:[%s1473_s1 + $0x4] ss:$8 sps:$4 sm:$0xff] (!%p140_p2)   ;;  %v943_v1 = vld [vmem:[%s1473_s1] ss:$8 sps:$4 sm:$0xff] (!%p140_p2)   ;;  %v944_v2 = vld [vmem:[%s1473_s1 + $0x14] ss:$8 sps:$4 sm:$0xff] (!%p140_p2)  }
   0x6   : > { %143 = sbr.rel (%p140_p2) target bundleno = 368 (0x170), region = 32  ;;  %428 = vmatprep.subr.bf16.mxu0 (!%p140_p2), %v941_v0  ;;  %901 = vmatprep.subr.bf16.mxu1 (!%p140_p2), %v941_v0  ;;  %v946_v3 = vld [vmem:[%s1473_s1 + $0x10] ss:$8 sps:$4 sm:$0xff] (!%p140_p2)   ;;  %v947_v4 = vld [vmem:[%s1473_s1 + $0x24] ss:$8 sps:$4 sm:$0xff] (!%p140_p2)   ;;  %s858_s24 = sshll.u32 (!%p140_p2), %s1087_s13, 4 }
   0x7   : > { %429 = vmatpush1.bf16.msra.mxu0 (!%p140_p2), %v943_v1  ;;  %917 = vmatpush1.bf16.msra.mxu1 (!%p140_p2), %v943_v1  ;;  %v949_v5 = vld [vmem:[%s1473_s1 + $0x20] ss:$8 sps:$4 sm:$0xff] (!%p140_p2)   ;;  %p165_p3 = scmp.lt.s32.totalorder (!%p140_p2), %s858_s24, 31  ;;  %v950_v6 = vld [vmem:[%s1473_s1 + $0x34] ss:$8 sps:$4 sm:$0xff] (!%p140_p2)   ;;  %p171_p4 = scmp.lt.s32.totalorder (!%p140_p2), %s1087_s13, 1 }
   0x8   : > { %430 = vmatprep.subr.bf16.mxu0 (!%p140_p2), %v944_v2  ;;  %902 = vmatprep.subr.bf16.mxu1 (!%p140_p2), %v944_v2  ;;  %v952_v7 = vld [vmem:[%s1473_s1 + $0x30] ss:$8 sps:$4 sm:$0xff] (!%p140_p2)   ;;  %v953_v8 = vld [vmem:[%s1473_s1 + $0x44] ss:$8 sps:$4 sm:$0xff] (!%p140_p2)   ;;  %v955_v9 = vld [vmem:[%s1473_s1 + $0x40] ss:$8 sps:$4 sm:$0xff] (!%p140_p2)  }
   0x9   : > { %v956_v10 = vld [vmem:[%s1473_s1 + $0x54] ss:$8 sps:$4 sm:$0xff] (!%p140_p2)   ;;  %v958_v11 = vld [vmem:[%s1473_s1 + $0x50] ss:$8 sps:$4 sm:$0xff] (!%p140_p2)   ;;  %v959_v12 = vld [vmem:[%s1473_s1 + $0x64] ss:$8 sps:$4 sm:$0xff] (!%p140_p2)  }
   0xa   : > { %v961_v18 = vld [vmem:[%s1473_s1 + $0x60] ss:$8 sps:$4 sm:$0xff] (!%p140_p2)   ;;  %v962_v20 = vld [vmem:[%s1473_s1 + $0x74] ss:$8 sps:$4 sm:$0xff] (!%p140_p2)   ;;  %v964_v21 = vld [vmem:[%s1473_s1 + $0x70] ss:$8 sps:$4 sm:$0xff] (!%p140_p2)  }
   0xb   : > { %431 = vmatpush1.bf16.msra.mxu0 (!%p140_p2), %v946_v3  ;;  %918 = vmatpush1.bf16.msra.mxu1 (!%p140_p2), %v946_v3  ;;  %v965_v22 = vld [vmem:[%s1473_s1 + $0x84] ss:$8 sps:$4 sm:$0xff] (!%p140_p2)   ;;  %v967_v23 = vld [vmem:[%s1473_s1 + $0x80] ss:$8 sps:$4 sm:$0xff] (!%p140_p2)   ;;  %v968_v24 = vld [vmem:[%s1473_s1 + $0x94] ss:$8 sps:$4 sm:$0xff] (!%p140_p2)  }
   0xc   : > { %432 = vmatprep.subr.bf16.mxu0 (!%p140_p2), %v947_v4  ;;  %903 = vmatprep.subr.bf16.mxu1 (!%p140_p2), %v947_v4  ;;  %v970_v25 = vld [vmem:[%s1473_s1 + $0x90] ss:$8 sps:$4 sm:$0xff] (!%p140_p2)   ;;  %v971_v26 = vld [vmem:[%s1473_s1 + $0xa4] ss:$8 sps:$4 sm:$0xff] (!%p140_p2)   ;;  %v973_v27 = vld [vmem:[%s1473_s1 + $0xa0] ss:$8 sps:$4 sm:$0xff] (!%p140_p2)  }
   0xd   : > { %s1477_s24 = smov (!%p165_p3, %s858_s24), 31  ;;  %v974_v28 = vld [vmem:[%s1473_s1 + $0xb4] ss:$8 sps:$4 sm:$0xff]   ;;  %v976_v29 = vld [vmem:[%s1473_s1 + $0xb0] ss:$8 sps:$4 sm:$0xff]   ;;  %s1479_s13 = smov (!%p171_p4, %s1087_s13), 1 }
   0xe   : > { %s899_s8 = sshll.u32 %s1477_s24, 4  ;;  %v977_v30 = vld [vmem:[%s1473_s1 + $0xc4] ss:$8 sps:$4 sm:$0xff]   ;;  %v979_v31 = vld [vmem:[%s1473_s1 + $0xc0] ss:$8 sps:$4 sm:$0xff]  }
   0xf   : > { %433 = vmatpush1.bf16.msra.mxu0 %v949_v5  ;;  %919 = vmatpush1.bf16.msra.mxu1 %v949_v5  ;;  %s1128_s15 = scalar_lea.vmem %s1472_s0, %s899_s8  ;;  %v980_v32 = vld [vmem:[%s1473_s1 + $0xd4] ss:$8 sps:$4 sm:$0xff]   ;;  %v982_v33 = vld [vmem:[%s1473_s1 + $0xd0] ss:$8 sps:$4 sm:$0xff]   ;;  %v983_v34 = vld [vmem:[%s1473_s1 + $0xe4] ss:$8 sps:$4 sm:$0xff]  }
  0x10   : > { %434 = vmatprep.subr.bf16.mxu0 %v950_v6  ;;  %904 = vmatprep.subr.bf16.mxu1 %v950_v6  ;;  %v177_v13 = vld [vmem:[%s1128_s15 + $0x8] sm:$0xff]  ;;  %v179_v14 = vld [vmem:[%s1128_s15 + $0x18] sm:$0xff]  ;;  %v176_v38 = vld [vmem:[%s1128_s15] sm:$0xff] }
  0x11   : > { %v209_v15 = vpack.c.bf16 %v179_v14, %v177_v13  ;;  %v193_v16 = vld [vmem:[%s1128_s15 + $0x88] sm:$0xff]  ;;  %v195_v17 = vld [vmem:[%s1128_s15 + $0x98] sm:$0xff]  ;;  %v178_v39 = vld [vmem:[%s1128_s15 + $0x10] sm:$0xff] }
  0x12   : > { %v217_v19 = vpack.c.bf16 %v195_v17, %v193_v16  ;;  %v985_v35 = vld [vmem:[%s1473_s1 + $0xe0] ss:$8 sps:$4 sm:$0xff]   ;;  %v986_v36 = vld [vmem:[%s1473_s1 + $0xf4] ss:$8 sps:$4 sm:$0xff]   ;;  %v988_v37 = vld [vmem:[%s1473_s1 + $0xf0] ss:$8 sps:$4 sm:$0xff]   ;;  %v208_v46 = vpack.c.bf16 %v178_v39, %v176_v38  ;;  %v258_v16 = vlaneseq }
  0x13   : > { %435 = vmatpush1.bf16.msra.mxu0 %v952_v7  ;;  %920 = vmatpush1.bf16.msra.mxu1 %v952_v7  ;;  %v192_v40 = vld [vmem:[%s1128_s15 + $0x80] sm:$0xff]  ;;  %v194_v41 = vld [vmem:[%s1128_s15 + $0x90] sm:$0xff]  ;;  %v181_v42 = vld [vmem:[%s1128_s15 + $0x28] sm:$0xff] }
  0x14   : > { %436 = vmatprep.subr.bf16.mxu0 %v953_v8  ;;  %905 = vmatprep.subr.bf16.mxu1 %v953_v8  ;;  %v183_v43 = vld [vmem:[%s1128_s15 + $0x38] sm:$0xff]  ;;  %v197_v44 = vld [vmem:[%s1128_s15 + $0xa8] sm:$0xff]  ;;  %v216_v47 = vpack.c.bf16 %v194_v41, %v192_v40  ;;  %v180_v50 = vld [vmem:[%s1128_s15 + $0x20] sm:$0xff]  ;;  %v259_v17 = vshrl.u32 %v258_v16, 7 }
  0x15   : > { %460 = vmatprep.mubr.bf16.mxu0 %v209_v15  ;;  %500 = vmatprep.mubr.bf16.mxu1 %v217_v19  ;;  %v199_v45 = vld [vmem:[%s1128_s15 + $0xb8] sm:$0xff]  ;;  %v211_v48 = vpack.c.bf16 %v183_v43, %v181_v42  ;;  %v182_v51 = vld [vmem:[%s1128_s15 + $0x30] sm:$0xff]  ;;  %v196_v52 = vld [vmem:[%s1128_s15 + $0xa0] sm:$0xff] }
  0x16   : > { %v219_v49 = vpack.c.bf16 %v199_v45, %v197_v44  ;;  %v198_v53 = vld [vmem:[%s1128_s15 + $0xb0] sm:$0xff]  ;;  %v185_v54 = vld [vmem:[%s1128_s15 + $0x48] sm:$0xff]  ;;  %v187_v55 = vld [vmem:[%s1128_s15 + $0x58] sm:$0xff]  ;;  %v210_v58 = vpack.c.bf16 %v182_v51, %v180_v50 }
  0x17   : > { %437 = vmatpush1.bf16.msra.mxu0 %v955_v9  ;;  %921 = vmatpush1.bf16.msra.mxu1 %v955_v9  ;;  %v201_v56 = vld [vmem:[%s1128_s15 + $0xc8] sm:$0xff]  ;;  %v203_v57 = vld [vmem:[%s1128_s15 + $0xd8] sm:$0xff]  ;;  %v218_v59 = vpack.c.bf16 %v198_v53, %v196_v52  ;;  %v213_v60 = vpack.c.bf16 %v187_v55, %v185_v54  ;;  %v184_v62 = vld [vmem:[%s1128_s15 + $0x40] sm:$0xff] }
  0x18   : > { %438 = vmatprep.subr.bf16.mxu0 %v956_v10  ;;  %906 = vmatprep.subr.bf16.mxu1 %v956_v10  ;;  %v221_v61 = vpack.c.bf16 %v203_v57, %v201_v56  ;;  %v186_v63 = vld [vmem:[%s1128_s15 + $0x50] sm:$0xff]  ;;  %v200_v0 = vld [vmem:[%s1128_s15 + $0xc0] sm:$0xff]  ;;  %v189_v2 = vld [vmem:[%s1128_s15 + $0x68] sm:$0xff] }
  0x19   : > { %v202_v1 = vld [vmem:[%s1128_s15 + $0xd0] sm:$0xff]  ;;  %v191_v3 = vld [vmem:[%s1128_s15 + $0x78] sm:$0xff]  ;;  %v205_v4 = vld [vmem:[%s1128_s15 + $0xe8] sm:$0xff]  ;;  %v212_v6 = vpack.c.bf16 %v186_v63, %v184_v62 }
  0x1a   : > { %v207_v5 = vld [vmem:[%s1128_s15 + $0xf8] sm:$0xff]  ;;  %v220_v7 = vpack.c.bf16 %v202_v1, %v200_v0  ;;  %v215_v8 = vpack.c.bf16 %v191_v3, %v189_v2  ;;  %v188_v10 = vld [vmem:[%s1128_s15 + $0x60] sm:$0xff]  ;;  %v206_v13 = vld [vmem:[%s1128_s15 + $0xf0] sm:$0xff] }
  0x1b   : > { %439 = vmatpush1.bf16.msra.mxu0 %v958_v11  ;;  %922 = vmatpush1.bf16.msra.mxu1 %v958_v11  ;;  %v223_v9 = vpack.c.bf16 %v207_v5, %v205_v4  ;;  %v190_v11 = vld [vmem:[%s1128_s15 + $0x70] sm:$0xff]  ;;  %v256_v19 = vld [vmem:[%s1474_s2] sm:$0x3] }
  0x1c   : > { %440 = vmatprep.subr.bf16.mxu0 %v959_v12  ;;  %907 = vmatprep.subr.bf16.mxu1 %v959_v12  ;;  %v204_v12 = vld [vmem:[%s1128_s15 + $0xe0] sm:$0xff]  ;;  %v214_v14 = vpack.c.bf16 %v190_v11, %v188_v10  ;;  %s900_s15 = sshll.u32 %s1479_s13, 5 }
  0x1d   : > { %v222_v15 = vpack.c.bf16 %v206_v13, %v204_v12  ;;  %s175_s11 = scalar_lea.vmem %s1475_s3, %s900_s15 }
  0x1f   : > { %441 = vmatpush1.bf16.msra.mxu0 %v961_v18  ;;  %923 = vmatpush1.bf16.msra.mxu1 %v961_v18  ;;  %v260_v18 = vsub.s32 0, %v259_v17 }
  0x20   : > { %442 = vmatprep.subr.bf16.mxu0 %v962_v20  ;;  %908 = vmatprep.subr.bf16.mxu1 %v962_v20  ;;  %v264_v20 = vsub.s32 1, %v259_v17 }
  0x23   : > { %443 = vmatpush1.bf16.msra.mxu0 %v964_v21  ;;  %924 = vmatpush1.bf16.msra.mxu1 %v964_v21  ;;  %v1228_v21 = vrot.slane %v256_v19, %v260_v18 }
  0x24   : > { %444 = vmatprep.subr.bf16.mxu0 %v965_v22  ;;  %909 = vmatprep.subr.bf16.mxu1 %v965_v22  ;;  %v1230_v22 = vrot.slane %v256_v19, %v264_v20 }
  0x27   : > { %445 = vmatpush1.bf16.msra.mxu0 %v967_v23  ;;  %925 = vmatpush1.bf16.msra.mxu1 %v967_v23 }
  0x28   : > { %446 = vmatprep.subr.bf16.mxu0 %v968_v24  ;;  %910 = vmatprep.subr.bf16.mxu1 %v968_v24 }
  0x2b   : > { %447 = vmatpush1.bf16.msra.mxu0 %v970_v25  ;;  %926 = vmatpush1.bf16.msra.mxu1 %v970_v25 }
  0x2c   : > { %448 = vmatprep.subr.bf16.mxu0 %v971_v26  ;;  %911 = vmatprep.subr.bf16.mxu1 %v971_v26 }
  0x2f   : > { %449 = vmatpush1.bf16.msra.mxu0 %v973_v27  ;;  %927 = vmatpush1.bf16.msra.mxu1 %v973_v27 }
  0x30   : > { %450 = vmatprep.subr.bf16.mxu0 %v974_v28  ;;  %912 = vmatprep.subr.bf16.mxu1 %v974_v28 }
  0x33   : > { %451 = vmatpush1.bf16.msra.mxu0 %v976_v29  ;;  %928 = vmatpush1.bf16.msra.mxu1 %v976_v29 }
  0x34   : > { %452 = vmatprep.subr.bf16.mxu0 %v977_v30  ;;  %913 = vmatprep.subr.bf16.mxu1 %v977_v30 }
  0x37   : > { %453 = vmatpush1.bf16.msra.mxu0 %v979_v31  ;;  %929 = vmatpush1.bf16.msra.mxu1 %v979_v31 }
  0x38   : > { %454 = vmatprep.subr.bf16.mxu0 %v980_v32  ;;  %914 = vmatprep.subr.bf16.mxu1 %v980_v32 }
  0x3b   : > { %455 = vmatpush1.bf16.msra.mxu0 %v982_v33  ;;  %930 = vmatpush1.bf16.msra.mxu1 %v982_v33 }
  0x3c   : > { %456 = vmatprep.subr.bf16.mxu0 %v983_v34  ;;  %915 = vmatprep.subr.bf16.mxu1 %v983_v34 }
  0x3f   : > { %457 = vmatpush1.bf16.msra.mxu0 %v985_v35  ;;  %931 = vmatpush1.bf16.msra.mxu1 %v985_v35 }
  0x40   : > { %458 = vmatprep.subr.bf16.mxu0 %v986_v36  ;;  %916 = vmatprep.subr.bf16.mxu1 %v986_v36 }
  0x43   : > { %459 = vmatpush1.bf16.msra.mxu0 %v988_v37  ;;  %932 = vmatpush1.bf16.msra.mxu1 %v988_v37 }
  0x46   : > { %461 = vmatmul.mubr.bf16.vlgmr.msra.gmra.mrb[0].mxu0 %v208_v46  ;;  %501 = vmatmul.mubr.bf16.vlgmr.msra.gmra.mrb[0].mxu1 %v216_v47 }
  0x47   : > { %470 = vmatprep.mubr.bf16.mxu0 %v211_v48  ;;  %510 = vmatprep.mubr.bf16.mxu1 %v219_v49 }
  0x4e   : > { %471 = vmatmul.mubr.bf16.gmra.mrb[4].mxu0 %v210_v58  ;;  %511 = vmatmul.mubr.bf16.gmra.mrb[4].mxu1 %v218_v59 }
  0x4f   : > { %480 = vmatprep.mubr.bf16.mxu0 %v213_v60  ;;  %520 = vmatprep.mubr.bf16.mxu1 %v221_v61 }
  0x56   : > { %481 = vmatmul.mubr.bf16.gmra.mrb[8].mxu0 %v212_v6  ;;  %521 = vmatmul.mubr.bf16.gmra.mrb[8].mxu1 %v220_v7 }
  0x57   : > { %490 = vmatprep.mubr.bf16.mxu0 %v215_v8  ;;  %530 = vmatprep.mubr.bf16.mxu1 %v223_v9 }
  0x5e   : > { %491 = vmatmul.mubr.bf16.gmra.mrb[12].mxu0 %v214_v14  ;;  %531 = vmatmul.mubr.bf16.gmra.mrb[12].mxu1 %v222_v15 }
 0x119   : > { %v462_v23 = vpop.f32.mrb[0].mxu0  ;;  %v502_v24 = vpop.f32.mrb[0].mxu1 }
 0x11a   : > { %v463_v25 = vadd.f32 %v462_v23, %v1228_v21  ;;  %v464_v26 = vpop.f32.mrb[1].mxu0  ;;  %v504_v27 = vpop.f32.mrb[1].mxu1  ;;  %v1247_v50 = vadd.f32 %v502_v24, %v1228_v21 }
 0x11b   : > { %v465_v28 = vadd.f32 %v464_v26, %v1230_v22  ;;  %v466_v29 = vpop.f32.mrb[2].mxu0  ;;  %v506_v30 = vpop.f32.mrb[2].mxu1  ;;  %v1250_v51 = vadd.f32 %v504_v27, %v1230_v22 }
 0x11c   : > { %v573_v31 = vmul.f32 0.70710677, %v463_v25  ;;  %v467_v33 = vadd.f32 %v466_v29, %v1228_v21  ;;  %v468_v34 = vpop.f32.mrb[3].mxu0  ;;  %v508_v35 = vpop.f32.mrb[3].mxu1  ;;  %v541_v61 = vmul.f32 0.5, %v463_v25  ;;  %v1265_v0 = vadd.f32 %v506_v30, %v1228_v21 }
 0x11d   : > { %v574_v32 = vmul.f32 0.70710677, %v465_v28  ;;  %v469_v36 = vadd.f32 %v468_v34, %v1230_v22  ;;  %v589_v62 = vmul.f32 0.70710677, %v1247_v50  ;;  %v590_v63 = vmul.f32 0.70710677, %v1250_v51 }
 0x11e   : > { %989 = verf.f32 %v573_v31  ;;  %v575_v37 = vmul.f32 0.70710677, %v467_v33  ;;  %v542_v8 = vmul.f32 0.5, %v465_v28  ;;  %v1275_v9 = vadd.f32 %v508_v35, %v1230_v22 }
 0x11f   : > { %991 = verf.f32 %v574_v32  ;;  %v576_v38 = vmul.f32 0.70710677, %v469_v36  ;;  %v543_v12 = vmul.f32 0.5, %v467_v33  ;;  %v591_v17 = vmul.f32 0.70710677, %v1265_v0 }
 0x120   : > { %993 = verf.f32 %v575_v37  ;;  %v544_v20 = vmul.f32 0.5, %v469_v36  ;;  %v592_v26 = vmul.f32 0.70710677, %v1275_v9 }
 0x121   : > { %v472_v39 = vpop.f32.mrb[4].mxu0  ;;  %v512_v41 = vpop.f32.mrb[4].mxu1  ;;  %995 = verf.f32 %v576_v38 }
 0x122   : > { %v473_v40 = vadd.f32 %v472_v39, %v1228_v21  ;;  %v474_v42 = vpop.f32.mrb[5].mxu0  ;;  %v1240_v44 = vpop.f32.mrb[5].mxu1  ;;  %v1285_v18 = vadd.f32 %v512_v41, %v1228_v21 }
 0x123   : > { %v1238_v43 = vadd.f32 %v474_v42, %v1230_v22  ;;  %v476_v45 = vpop.f32.mrb[6].mxu0  ;;  %v1242_v47 = vpop.f32.mrb[6].mxu1 }
 0x124   : > { %v577_v46 = vmul.f32 0.70710677, %v473_v40  ;;  %v478_v48 = vpop.f32.mrb[7].mxu0  ;;  %v1244_v49 = vpop.f32.mrb[7].mxu1  ;;  %v1254_v53 = vadd.f32 %v476_v45, %v1228_v21  ;;  %v545_v27 = vmul.f32 0.5, %v473_v40 }
 0x125   : > { %v578_v52 = vmul.f32 0.70710677, %v1238_v43  ;;  %v1257_v54 = vadd.f32 %v478_v48, %v1230_v22  ;;  %v593_v36 = vmul.f32 0.70710677, %v1285_v18 }
 0x126   : > { %997 = verf.f32 %v577_v46  ;;  %v579_v57 = vmul.f32 0.70710677, %v1254_v53 }
 0x127   : > { %999 = verf.f32 %v578_v52  ;;  %v580_v3 = vmul.f32 0.70710677, %v1257_v54  ;;  %v546_v52 = vmul.f32 0.5, %v1238_v43 }
 0x128   : > { %v990_v55 = vpop.eup %989  ;;  %1001 = verf.f32 %v579_v57 }
 0x129   : > { %v637_v56 = vadd.f32 1.0, %v990_v55  ;;  %v482_v58 = vpop.f32.mrb[8].mxu0  ;;  %v1260_v59 = vpop.f32.mrb[8].mxu1  ;;  %1003 = verf.f32 %v580_v3 }
 0x12a   : > { %v992_v60 = vpop.eup %991  ;;  %v1267_v1 = vpop.f32.mrb[9].mxu0  ;;  %1005 = verf.f32 %v589_v62  ;;  %v1289_v28 = vadd.f32 %v482_v58, %v1228_v21 }
 0x12b   : > { %v638_v2 = vadd.f32 1.0, %v992_v60  ;;  %v1270_v4 = vpop.f32.mrb[9].mxu1  ;;  %v1272_v5 = vpop.f32.mrb[10].mxu0  ;;  %v669_v7 = vmul.f32 %v637_v56, %v541_v61  ;;  %1007 = verf.f32 %v590_v63  ;;  %v515_v56 = vadd.f32 %v1240_v44, %v1230_v22 }
 0x12c   : > { %v994_v6 = vpop.eup %993  ;;  %v1277_v10 = vpop.f32.mrb[10].mxu1  ;;  %1009 = verf.f32 %v591_v17  ;;  %v517_v44 = vadd.f32 %v1242_v47, %v1228_v21 }
 0x12d   : > { %v1279_v11 = vpop.f32.mrb[11].mxu0  ;;  %v639_v13 = vadd.f32 1.0, %v994_v6  ;;  %v1281_v14 = vpop.f32.mrb[11].mxu1  ;;  %v670_v16 = vmul.f32 %v638_v2, %v542_v8  ;;  %v733_v25 = vmul.f32 %v669_v7, %v669_v7  ;;  %1011 = verf.f32 %v592_v26 }
 0x12e   : > { %v996_v15 = vpop.eup %995  ;;  %v581_v2 = vmul.f32 0.70710677, %v1289_v28  ;;  %1013 = verf.f32 %v593_v36  ;;  %v547_v6 = vmul.f32 0.5, %v1254_v53  ;;  %v485_v53 = vadd.f32 %v1267_v1, %v1230_v22 }
 0x12f   : > { %v671_v19 = vmul.f32 %v639_v13, %v543_v12  ;;  %v640_v23 = vadd.f32 1.0, %v996_v15  ;;  %v734_v37 = vmul.f32 %v670_v16, %v670_v16 }
 0x130   : > { %v998_v24 = vpop.eup %997  ;;  %1015 = verf.f32 %v581_v2 }
 0x131   : > { %v701_v29 = vadd.f32 %v671_v19, %v669_v7  ;;  %v735_v30 = vmul.f32 %v671_v19, %v671_v19  ;;  %v672_v31 = vmul.f32 %v640_v23, %v544_v20  ;;  %v641_v32 = vadd.f32 1.0, %v998_v24  ;;  %v1291_v33 = vpop.f32.mrb[12].mxu0  ;;  %v1293_v34 = vpop.f32.mrb[12].mxu1 }
 0x132   : > { %v1000_v35 = vpop.eup %999  ;;  %v1296_v38 = vpop.f32.mrb[13].mxu0  ;;  %v594_v19 = vmul.f32 0.70710677, %v515_v56  ;;  %v548_v20 = vmul.f32 0.5, %v1257_v54  ;;  %v1324_v54 = vadd.f32 %v1272_v5, %v1228_v21  ;;  %v561_v5 = vmul.f32 0.5, %v1285_v18 }
 0x133   : > { %v1298_v39 = vpop.f32.mrb[13].mxu1  ;;  %v765_v40 = vadd.f32 %v735_v30, %v733_v25  ;;  %v716_v41 = vadd.f32 %v672_v31, %v670_v16  ;;  %v736_v42 = vmul.f32 %v672_v31, %v672_v31  ;;  %v673_v45 = vmul.f32 %v641_v32, %v545_v27  ;;  %v1300_v46 = vpop.f32.mrb[14].mxu0 }
 0x134   : > { %v1302_v48 = vpop.f32.mrb[14].mxu1  ;;  %v642_v55 = vadd.f32 1.0, %v1000_v35  ;;  %v1307_v57 = vpop.f32.mrb[15].mxu0  ;;  %v595_v27 = vmul.f32 0.70710677, %v517_v44  ;;  %v519_v31 = vadd.f32 %v1244_v49, %v1230_v22  ;;  %1017 = verf.f32 %v594_v19 }
 0x135   : > { %v1309_v58 = vpop.f32.mrb[15].mxu1  ;;  %v1002_v60 = vpop.eup %1001  ;;  %v780_v61 = vadd.f32 %v736_v42, %v734_v37  ;;  %v702_v62 = vadd.f32 %v701_v29, %v673_v45  ;;  %v737_v63 = vmul.f32 %v673_v45, %v673_v45  ;;  %v582_v32 = vmul.f32 0.70710677, %v485_v53 }
 0x136   : > { %v674_v3 = vmul.f32 %v642_v55, %v546_v52  ;;  %v643_v7 = vadd.f32 1.0, %v1002_v60  ;;  %v1004_v43 = vpop.eup %1003  ;;  %v559_v42 = vmul.f32 0.5, %v1265_v0  ;;  %v583_v45 = vmul.f32 0.70710677, %v1324_v54 }
 0x137   : > { %v766_v8 = vadd.f32 %v765_v40, %v737_v63  ;;  %v1006_v12 = vpop.eup %1005  ;;  %v644_v23 = vadd.f32 1.0, %v1004_v43  ;;  %v557_v40 = vmul.f32 0.5, %v1247_v50  ;;  %1019 = verf.f32 %v582_v32 }
 0x138   : > { %v717_v13 = vadd.f32 %v716_v41, %v674_v3  ;;  %v738_v15 = vmul.f32 %v674_v3, %v674_v3  ;;  %v675_v16 = vmul.f32 %v643_v7, %v547_v6  ;;  %v1008_v17 = vpop.eup %1007  ;;  %v653_v1 = vadd.f32 1.0, %v1006_v12 }
 0x139   : > { %v676_v29 = vmul.f32 %v644_v23, %v548_v20  ;;  %v1010_v30 = vpop.eup %1009  ;;  %v558_v41 = vmul.f32 0.5, %v1250_v51  ;;  %1021 = verf.f32 %v595_v27  ;;  %v560_v55 = vmul.f32 0.5, %v1275_v9 }
 0x13a   : > { %v781_v24 = vadd.f32 %v780_v61, %v738_v15  ;;  %v703_v25 = vadd.f32 %v702_v62, %v675_v16  ;;  %v739_v26 = vmul.f32 %v675_v16, %v675_v16  ;;  %v1012_v36 = vpop.eup %1011  ;;  %v1334_v60 = vmul.f32 0.5, %v515_v56 }
 0x13b   : > { %v1320_v35 = vadd.f32 %v717_v13, %v676_v29  ;;  %v740_v37 = vmul.f32 %v676_v29, %v676_v29  ;;  %v1014_v52 = vpop.eup %1013  ;;  %v489_v50 = vadd.f32 %v1279_v11, %v1230_v22  ;;  %v1338_v51 = vmul.f32 0.5, %v517_v44 }
 0x13c   : > { %v767_v47 = vadd.f32 %v766_v8, %v739_v26  ;;  %v1016_v61 = vpop.eup %1015  ;;  %v596_v62 = vmul.f32 0.70710677, %v519_v31  ;;  %1023 = verf.f32 %v583_v45  ;;  %v1342_v0 = vadd.f32 %v1291_v33, %v1228_v21 }
 0x13d   : > { %v1329_v49 = vadd.f32 %v781_v24, %v740_v37  ;;  %v1344_v63 = vmul.f32 %v653_v1, %v557_v40  ;;  %v549_v9 = vmul.f32 0.5, %v1289_v28  ;;  %v645_v2 = vadd.f32 1.0, %v1016_v61 }
 0x13e   : > { %v584_v18 = vmul.f32 0.70710677, %v489_v50  ;;  %v654_v56 = vadd.f32 1.0, %v1008_v17  ;;  %v655_v3 = vadd.f32 1.0, %v1010_v30  ;;  %v656_v6 = vadd.f32 1.0, %v1012_v36 }
 0x13f   : > { %v585_v11 = vmul.f32 0.70710677, %v1342_v0  ;;  %v657_v7 = vadd.f32 1.0, %v1014_v52  ;;  %v677_v43 = vmul.f32 %v645_v2, %v549_v9  ;;  %v1350_v8 = vadd.f32 %v1260_v59, %v1228_v21  ;;  %v1018_v59 = vpop.eup %1017 }
 0x140   : > { %1025 = verf.f32 %v584_v18  ;;  %v1352_v33 = vmul.f32 0.5, %v519_v31  ;;  %v1356_v28 = vadd.f32 %v1296_v38, %v1230_v22  ;;  %v1360_v44 = vadd.f32 %v1300_v46, %v1228_v21 }
 0x141   : > { %1027 = verf.f32 %v596_v62  ;;  %v704_v12 = vadd.f32 %v703_v25, %v677_v43  ;;  %v741_v13 = vmul.f32 %v677_v43, %v677_v43  ;;  %v1364_v15 = vadd.f32 %v1277_v10, %v1228_v21  ;;  %v1020_v46 = vpop.eup %1019 }
 0x142   : > { %1029 = verf.f32 %v585_v11  ;;  %v1368_v16 = vmul.f32 %v1344_v63, %v1344_v63  ;;  %v1370_v17 = vmul.f32 %v654_v56, %v558_v41  ;;  %v1372_v38 = vmul.f32 %v655_v3, %v559_v42 }
 0x143   : > { %v586_v19 = vmul.f32 0.70710677, %v1356_v28  ;;  %v1375_v20 = vmul.f32 %v656_v6, %v560_v55  ;;  %v1377_v23 = vmul.f32 %v657_v7, %v561_v5  ;;  %v768_v24 = vadd.f32 %v767_v47, %v741_v13  ;;  %v1022_v25 = vpop.eup %1021 }
 0x144   : > { %v597_v10 = vmul.f32 0.70710677, %v1350_v8  ;;  %v550_v26 = vmul.f32 0.5, %v485_v53  ;;  %v646_v27 = vadd.f32 1.0, %v1020_v46  ;;  %v587_v29 = vmul.f32 0.70710677, %v1360_v44 }
 0x145   : > { %1031 = verf.f32 %v586_v19  ;;  %v658_v30 = vadd.f32 1.0, %v1018_v59  ;;  %v1383_v31 = vadd.f32 %v1270_v4, %v1230_v22  ;;  %v599_v32 = vmul.f32 0.70710677, %v1364_v15 }
 0x146   : > { %v1388_v37 = vadd.f32 %v1307_v57, %v1230_v22  ;;  %v1024_v47 = vpop.eup %1023  ;;  %v678_v36 = vmul.f32 %v646_v27, %v550_v26  ;;  %v1392_v53 = vadd.f32 %v1281_v14, %v1230_v22  ;;  %v1396_v40 = vadd.f32 %v1293_v34, %v1228_v21 }
 0x147   : > { %1033 = verf.f32 %v587_v29  ;;  %v659_v1 = vadd.f32 1.0, %v1022_v25  ;;  %v551_v4 = vmul.f32 0.5, %v1324_v54  ;;  %v647_v41 = vadd.f32 1.0, %v1024_v47 }
 0x148   : > { %v588_v42 = vmul.f32 0.70710677, %v1388_v37  ;;  %1035 = verf.f32 %v597_v10  ;;  %v719_v57 = vadd.f32 %v1320_v35, %v678_v36  ;;  %v742_v45 = vmul.f32 %v678_v36, %v678_v36 }
 0x149   : > { %v1403_v52 = vadd.f32 %v1302_v48, %v1228_v21  ;;  %v598_v55 = vmul.f32 0.70710677, %v1383_v31  ;;  %v679_v34 = vmul.f32 %v647_v41, %v551_v4  ;;  %1037 = verf.f32 %v599_v32 }
 0x14a   : > { %v1026_v14 = vpop.eup %1025  ;;  %v552_v5 = vmul.f32 0.5, %v489_v50  ;;  %v783_v54 = vadd.f32 %v1329_v49, %v742_v45  ;;  %v600_v9 = vmul.f32 0.70710677, %v1392_v53  ;;  %v601_v2 = vmul.f32 0.70710677, %v1396_v40 }
 0x14b   : > { %v1028_v61 = vpop.eup %1027  ;;  %v648_v62 = vadd.f32 1.0, %v1026_v14  ;;  %v705_v18 = vadd.f32 %v704_v12, %v679_v34  ;;  %v743_v56 = vmul.f32 %v679_v34, %v679_v34  ;;  %v1411_v21 = vadd.f32 %v1298_v39, %v1230_v22 }
 0x14c   : > { %v1030_v35 = vpop.eup %1029  ;;  %1039 = verf.f32 %v588_v42  ;;  %v553_v3 = vmul.f32 0.5, %v1342_v0  ;;  %v603_v6 = vmul.f32 0.70710677, %v1403_v52  ;;  %v660_v49 = vadd.f32 1.0, %v1028_v61 }
 0x14d   : > { %v680_v48 = vmul.f32 %v648_v62, %v552_v5  ;;  %v649_v50 = vadd.f32 1.0, %v1030_v35  ;;  %1041 = verf.f32 %v598_v55  ;;  %v769_v11 = vadd.f32 %v768_v24, %v743_v56 }
 0x14e   : > { %v1417_v7 = vadd.f32 %v1309_v58, %v1230_v22  ;;  %1043 = verf.f32 %v601_v2  ;;  %v554_v39 = vmul.f32 0.5, %v1356_v28  ;;  %v602_v0 = vmul.f32 0.70710677, %v1411_v21 }
 0x14f   : > { %v1032_v43 = vpop.eup %1031  ;;  %v720_v12 = vadd.f32 %v719_v57, %v680_v48  ;;  %v744_v13 = vmul.f32 %v680_v48, %v680_v48  ;;  %v681_v59 = vmul.f32 %v649_v50, %v553_v3  ;;  %1045 = verf.f32 %v600_v9 }
 0x150   : > { %v650_v19 = vadd.f32 1.0, %v1032_v43  ;;  %1047 = verf.f32 %v603_v6  ;;  %v555_v22 = vmul.f32 0.5, %v1360_v44  ;;  %v604_v27 = vmul.f32 0.70710677, %v1417_v7 }
 0x151   : > { %v1034_v46 = vpop.eup %1033  ;;  %v784_v10 = vadd.f32 %v783_v54, %v744_v13  ;;  %v706_v25 = vadd.f32 %v705_v18, %v681_v59  ;;  %v745_v26 = vmul.f32 %v681_v59, %v681_v59  ;;  %v750_v32 = vmul.f32 %v1370_v17, %v1370_v17 }
 0x152   : > { %v682_v24 = vmul.f32 %v650_v19, %v554_v39  ;;  %v651_v58 = vadd.f32 1.0, %v1034_v46  ;;  %v1036_v29 = vpop.eup %1035  ;;  %v1426_v28 = vmul.f32 %v658_v30, %v1334_v60  ;;  %v691_v47 = vmul.f32 %v659_v1, %v1338_v51 }
 0x153   : > { %v770_v36 = vadd.f32 %v769_v11, %v745_v26  ;;  %v1038_v4 = vpop.eup %1037  ;;  %1049 = verf.f32 %v602_v0  ;;  %v751_v44 = vmul.f32 %v1372_v38, %v1372_v38  ;;  %v752_v45 = vmul.f32 %v1375_v20, %v1375_v20 }
 0x154   : > { %v721_v41 = vadd.f32 %v720_v12, %v682_v24  ;;  %v746_v42 = vmul.f32 %v682_v24, %v682_v24  ;;  %v683_v57 = vmul.f32 %v651_v58, %v555_v22  ;;  %v753_v14 = vmul.f32 %v1377_v23, %v1377_v23 }
 0x155   : > { %v1436_v60 = vmul.f32 %v660_v49, %v1352_v33  ;;  %1051 = verf.f32 %v604_v27  ;;  %v565_v34 = vmul.f32 0.5, %v1350_v8  ;;  %v661_v5 = vadd.f32 1.0, %v1036_v29 }
 0x156   : > { %v1040_v30 = vpop.eup %1039  ;;  %v785_v51 = vadd.f32 %v784_v10, %v746_v42  ;;  %v707_v1 = vadd.f32 %v706_v25, %v683_v57  ;;  %v747_v55 = vmul.f32 %v683_v57, %v683_v57  ;;  %v556_v61 = vmul.f32 0.5, %v1388_v37 }
 0x157   : > { %v652_v54 = vadd.f32 1.0, %v1040_v30  ;;  %v1042_v62 = vpop.eup %1041  ;;  %v754_v9 = vmul.f32 %v1426_v28, %v1426_v28  ;;  %v755_v2 = vmul.f32 %v691_v47, %v691_v47  ;;  %v756_v56 = vmul.f32 %v1436_v60, %v1436_v60 }
 0x158   : > { %v708_v33 = vadd.f32 %v707_v1, %v1344_v63  ;;  %v771_v35 = vadd.f32 %v770_v36, %v747_v55  ;;  %v1044_v18 = vpop.eup %1043  ;;  %v566_v48 = vmul.f32 0.5, %v1383_v31  ;;  %v567_v8 = vmul.f32 0.5, %v1364_v15 }
 0x159   : > { %v684_v3 = vmul.f32 %v652_v54, %v556_v61  ;;  %v1046_v37 = vpop.eup %1045  ;;  %v663_v50 = vadd.f32 1.0, %v1038_v4  ;;  %v568_v6 = vmul.f32 0.5, %v1392_v53  ;;  %v693_v43 = vmul.f32 %v661_v5, %v565_v34 }
 0x15a   : > { %v709_v49 = vadd.f32 %v708_v33, %v1372_v38  ;;  %v772_v11 = vadd.f32 %v771_v35, %v1368_v16  ;;  %v1048_v63 = vpop.eup %1047  ;;  %v569_v12 = vmul.f32 0.5, %v1396_v40  ;;  %v662_v59 = vadd.f32 1.0, %v1042_v62 }
 0x15b   : > { %v722_v13 = vadd.f32 %v721_v41, %v684_v3  ;;  %v748_v31 = vmul.f32 %v684_v3, %v684_v3  ;;  %v665_v15 = vadd.f32 1.0, %v1044_v18  ;;  %v570_v53 = vmul.f32 0.5, %v1411_v21 }
 0x15c   : > { %v710_v39 = vadd.f32 %v709_v49, %v1377_v23  ;;  %v773_v19 = vadd.f32 %v772_v11, %v751_v44  ;;  %v571_v38 = vmul.f32 0.5, %v1403_v52  ;;  %v695_v10 = vmul.f32 %v663_v50, %v567_v8 }
 0x15d   : > { %v723_v16 = vadd.f32 %v722_v13, %v1370_v17  ;;  %v786_v0 = vadd.f32 %v785_v51, %v748_v31  ;;  %v1050_v46 = vpop.eup %1049  ;;  %v667_v40 = vadd.f32 1.0, %v1048_v63  ;;  %v757_v24 = vmul.f32 %v693_v43, %v693_v43 }
 0x15e   : > { %v774_v25 = vadd.f32 %v773_v19, %v753_v14  ;;  %v711_v26 = vadd.f32 %v710_v39, %v691_v47  ;;  %v664_v22 = vadd.f32 1.0, %v1046_v37  ;;  %v694_v27 = vmul.f32 %v662_v59, %v566_v48 }
 0x15f   : > { %v724_v23 = vadd.f32 %v723_v16, %v1375_v20  ;;  %v787_v58 = vadd.f32 %v786_v0, %v750_v32  ;;  %v1052_v21 = vpop.eup %1051  ;;  %v697_v52 = vmul.f32 %v665_v15, %v569_v12  ;;  %v666_v36 = vadd.f32 1.0, %v1050_v46 }
 0x160   : > { %v712_v29 = vadd.f32 %v711_v26, %v693_v43  ;;  %v775_v17 = vadd.f32 %v774_v25, %v755_v2  ;;  %v572_v42 = vmul.f32 0.5, %v1417_v7  ;;  %v759_v57 = vmul.f32 %v695_v10, %v695_v10 }
 0x161   : > { %v725_v4 = vadd.f32 %v724_v23, %v1426_v28  ;;  %v788_v41 = vadd.f32 %v787_v58, %v752_v45  ;;  %v699_v44 = vmul.f32 %v667_v40, %v571_v38  ;;  %v696_v30 = vmul.f32 %v664_v22, %v568_v6 }
 0x162   : > { %v713_v47 = vadd.f32 %v712_v29, %v695_v10  ;;  %v776_v14 = vadd.f32 %v775_v17, %v757_v24  ;;  %v668_v20 = vadd.f32 1.0, %v1052_v21  ;;  %v761_v1 = vmul.f32 %v697_v52, %v697_v52 }
 0x163   : > { %v789_v51 = vadd.f32 %v788_v41, %v754_v9  ;;  %v726_v32 = vadd.f32 %v725_v4, %v1436_v60  ;;  %v758_v5 = vmul.f32 %v694_v27, %v694_v27  ;;  %v698_v61 = vmul.f32 %v666_v36, %v570_v53 }
 0x164   : > { %v714_v55 = vadd.f32 %v713_v47, %v697_v52  ;;  %v777_v34 = vadd.f32 %v776_v14, %v759_v57  ;;  %v763_v54 = vmul.f32 %v699_v44, %v699_v44  ;;  %v760_v2 = vmul.f32 %v696_v30, %v696_v30 }
 0x165   : > { %v727_v7 = vadd.f32 %v726_v32, %v694_v27  ;;  %v790_v28 = vadd.f32 %v789_v51, %v756_v56  ;;  %v700_v33 = vmul.f32 %v668_v20, %v572_v42  ;;  %v762_v18 = vmul.f32 %v698_v61, %v698_v61 }
 0x166   : > { %v715_v45 = vadd.f32 %v714_v55, %v699_v44  ;;  %v778_v62 = vadd.f32 %v777_v34, %v761_v1 }
 0x167   : > { %v728_v9 = vadd.f32 %v727_v7, %v696_v30  ;;  %v791_v35 = vadd.f32 %v790_v28, %v758_v5  ;;  %v764_v37 = vmul.f32 %v700_v33, %v700_v33 }
 0x168   : > { %731 = vst [vmem:[%s175_s11] sm:$0xff] %v715_v45  ;;  %v779_v60 = vadd.f32 %v778_v62, %v763_v54 }
 0x169   : > { %v729_v48 = vadd.f32 %v728_v9, %v698_v61  ;;  %v792_v8 = vadd.f32 %v791_v35, %v760_v2 }
 0x16a   : > { %895 = vst [vmem:[%s175_s11 + $0x10] sm:$0xff] %v779_v60 }
 0x16b   : > { %v730_v3 = vadd.f32 %v729_v48, %v700_v33  ;;  %v793_v50 = vadd.f32 %v792_v8, %v762_v18 }
 0x16d   : > { %732 = vst [vmem:[%s175_s11 + $0x8] sm:$0xff] %v730_v3  ;;  %v794_v6 = vadd.f32 %v793_v50, %v764_v37 }
 0x16f   : > { %896 = vst [vmem:[%s175_s11 + $0x18] sm:$0xff] %v794_v6 }
 0x170 PF: > { %s13_s12 = sadd.s32 1, %s1059_s12  }
 0x171   : > { %p10_p5 = scmp.ge.s32.totalorder %s13_s12, 4  }
 0x173   :  { %12 = sbr.rel (!%p10_p5) target bundleno = 1 (0x1), region = 63 }

</bundles_post_ra>
